<compile_context>
chip_gen: v5e
topology: v5e:2x2
jax: 0.10.0
libtpu: 0.0.40
codegen_flags: <defaults>
</compile_context>

<pallas_src>
import functools

import jax
import jax.numpy as jnp
from jax.experimental import pallas as pl
from jax.experimental.pallas import tpu as pltpu


def _round_up(v, m):
    return ((v + m - 1) // m) * m


def _num_tensorcores():
    """TensorCores addressable by one pallas_call (megacore / v7x split)."""
    try:
        info = pltpu.get_tpu_info()
        for attr in ("num_cores", "core_count", "num_tensorcores",
                     "tensorcores_per_chip", "cores_per_chip"):
            v = getattr(info, attr, None)
            if isinstance(v, int) and v > 0:
                return v
    except Exception:
        pass
    try:
        kind = jax.devices()[0].device_kind.lower()
        if any(tag in kind for tag in ("v4", "v5p", "v7", "7x")):
            return 2
    except Exception:
        pass
    return 1


def _vmem_capacity_bytes():
    try:
        info = pltpu.get_tpu_info()
        for attr in ("vmem_capacity_bytes", "vmem_size_bytes", "vmem_bytes"):
            v = getattr(info, attr, None)
            if isinstance(v, int) and v > 0:
                return v
    except Exception:
        pass
    return 64 * 1024 * 1024  # conservative (v7x per-TC physical)


def _pick_time_chunk(T, max_tt):
    """Chunk length <= max_tt minimizing padded tail steps + per-chunk grid overhead."""
    max_tt = max(1, min(int(max_tt), int(T)))
    best_tt, best_score = 1, None
    for tt in range(1, max_tt + 1):
        n_chunks = -(-T // tt)
        # padded recurrent steps executed + ~2 step-equivalents of overhead per chunk
        score = n_chunks * tt + 2 * n_chunks
        if best_score is None or score < best_score or (score == best_score and tt > best_tt):
            best_tt, best_score = tt, score
    return best_tt


def _gru_rec_kernel(gi_ref, whh_ref, bhn_ref, h0_ref, out_ref, h_ref, *, tt, hp, unroll):
    """Recurrent part only (time-major blocks). Shapes (per block):
       gi_ref  (TT, Bb, 3*Hp)  hoisted input projection (biases folded, gate-padded)
       whh_ref (Hp, 3*Hp)      resident hidden-projection weight (transposed, gate-padded)
       bhn_ref (1, Hp)         b_hn (must stay inside r * (W_hn h + b_hn))
       h0_ref  (Bb, Hp)        initial hidden for this batch slice
       out_ref (TT, Bb, Hp)    per-step hidden outputs
       h_ref   (Bb, Hp) f32    VMEM scratch carrying h across time chunks
    """
    c = pl.program_id(1)  # time-chunk axis (innermost, sequential)

    @pl.when(c == 0)
    def _init():
        h_ref[...] = h0_ref[...].astype(jnp.float32)

    whh = whh_ref[...]  # resident in VMEM across the whole grid
    # Hoist the (1,Hp)->(Bb,Hp) broadcast out of the unrolled loop (JAX does not CSE it).
    b_hn = jnp.broadcast_to(bhn_ref[...].astype(jnp.float32), h_ref.shape)

    def step(s, h_prev):
        gi = gi_ref[s].astype(jnp.float32)                        # dense (Bb, 3*Hp) tile read
        gh = jnp.dot(h_prev.astype(whh.dtype), whh,
                     preferred_element_type=jnp.float32)          # (Bb, 3*Hp)
        i_r, i_z, i_n = gi[:, :hp], gi[:, hp:2 * hp], gi[:, 2 * hp:]
        h_r, h_z, h_n = gh[:, :hp], gh[:, hp:2 * hp], gh[:, 2 * hp:]
        r = jax.nn.sigmoid(i_r + h_r)
        z = jax.nn.sigmoid(i_z + h_z)
        n = jnp.tanh(i_n + r * (h_n + b_hn))
        h_new = (1.0 - z) * n + z * h_prev
        out_ref[s] = h_new.astype(out_ref.dtype)                  # dense full-tile store
        return h_new

    h_ref[...] = jax.lax.fori_loop(0, tt, step, h_ref[...], unroll=unroll)


def gru_pallas(x, w_ih, w_hh, b_ih, b_hh, h0, *, time_block=128,
               matmul_dtype=jnp.float32):
    """Batch-first GRU. x: (B,T,D); PyTorch-layout params w_ih (3H,D), w_hh (3H,H),
    b_ih/b_hh (3H,) with gate order r,z,n; h0: (B,H).
    Returns out (B,T,H), hn (1,B,H)."""
    B, T, D = x.shape
    H = w_hh.shape[1]
    Hp = _round_up(H, 128)            # lane-aligned per-gate slab
    Bp = _round_up(B, 8)              # sublane-aligned batch

    # Split the batch across TensorCores only where a second core actually exists.
    n_tc = _num_tensorcores()
    nb = 2 if (n_tc >= 2 and Bp % 16 == 0) else 1
    Bb = Bp // nb

    f32 = jnp.float32
    w_bytes = jnp.dtype(matmul_dtype).itemsize
    out_bytes = jnp.dtype(x.dtype).itemsize

    # ---- derive TT and vmem limit from the per-chip VMEM budget (no hardcoded 32 MiB) ----
    vmem_cap = _vmem_capacity_bytes()
    fixed_vmem = (2 * Hp * 3 * Hp * w_bytes        # W_hh (double-buffered by Pallas)
                  + 2 * 8 * Hp * 4                 # b_hn (sublane-padded)
                  + 2 * Bb * Hp * 4                # h0
                  + Bb * Hp * 4)                   # h scratch
    per_step_vmem = 2 * Bb * 3 * Hp * 4 + 2 * Bb * Hp * out_bytes   # gi + out blocks (x2 buffers)
    budget = int(vmem_cap * 0.7)
    tt_cap = max(1, (budget - fixed_vmem) // per_step_vmem)
    TT = _pick_time_chunk(T, min(time_block, tt_cap))
    Tp = _round_up(T, TT)

    # Bound the inner unroll so large Hp does not spill the 64-entry vreg file.
    if Hp <= 256:
        unroll = min(TT, 16)
    elif Hp <= 512:
        unroll = min(TT, 4)
    else:
        unroll = min(TT, 2)
    unroll = max(1, unroll)

    vmem_limit = int(min(vmem_cap, fixed_vmem + per_step_vmem * TT + (4 << 20)))
    vmem_limit = max(vmem_limit, 16 * 1024 * 1024)

    # ---- parameter repacking: each gate owns a 128-aligned column slab ----
    w_ih_g = w_ih.reshape(3, H, D).astype(f32)
    w_hh_g = w_hh.reshape(3, H, H).astype(f32)
    b_ih_g = b_ih.reshape(3, H).astype(f32)
    b_hh_g = b_hh.reshape(3, H).astype(f32)

    # (D, 3*Hp): each gate's columns start at a 128-aligned boundary g*Hp.
    w_ih_t = jnp.pad(jnp.transpose(w_ih_g, (2, 0, 1)),
                     ((0, 0), (0, 0), (0, Hp - H))).reshape(D, 3 * Hp)
    # (Hp, 3*Hp): zero-padded rows/cols -> padded lanes contribute exactly zero.
    w_hh_t = jnp.pad(jnp.transpose(w_hh_g, (2, 0, 1)),
                     ((0, Hp - H), (0, 0), (0, Hp - H))).reshape(Hp, 3 * Hp)
    w_hh_t = w_hh_t.astype(matmul_dtype)
    # Fold b_ih (all gates) and the r/z parts of b_hh into the hoisted projection.
    b_fold = jnp.stack([b_ih_g[0] + b_hh_g[0],
                        b_ih_g[1] + b_hh_g[1],
                        b_ih_g[2]], axis=0)
    b_fold = jnp.pad(b_fold, ((0, 0), (0, Hp - H))).reshape(1, 1, 3 * Hp)
    b_hn = jnp.pad(b_hh_g[2], (0, Hp - H)).reshape(1, Hp)

    x_p = jnp.pad(x.astype(f32), ((0, Bp - B), (0, Tp - T), (0, 0)))
    h0_p = jnp.pad(h0.astype(f32), ((0, Bp - B), (0, Hp - H)))

    # Hoisted input projection, produced TIME-MAJOR (Tp, Bp, 3*Hp) so per-step kernel
    # reads/stores are dense full (8,128) tiles.  One big matmul outside the recurrence.
    gi_all = jnp.einsum('btd,dk->tbk', x_p, w_ih_t,
                        preferred_element_type=f32) + b_fold

    kernel = functools.partial(_gru_rec_kernel, tt=TT, hp=Hp, unroll=unroll)
    out_p = pl.pallas_call(
        kernel,
        out_shape=jax.ShapeDtypeStruct((Tp, Bp, Hp), x.dtype),
        grid_spec=pltpu.PrefetchScalarGridSpec(
            num_scalar_prefetch=0,
            grid=(nb, Tp // TT),
            in_specs=[
                pl.BlockSpec((TT, Bb, 3 * Hp), lambda b, c: (c, b, 0)),  # gi chunk (time-major)
                pl.BlockSpec((Hp, 3 * Hp), lambda b, c: (0, 0)),         # W_hh^T (resident)
                pl.BlockSpec((1, Hp), lambda b, c: (0, 0)),              # b_hn
                pl.BlockSpec((Bb, Hp), lambda b, c: (b, 0)),             # h0 slice
            ],
            out_specs=pl.BlockSpec((TT, Bb, Hp), lambda b, c: (c, b, 0)),
            scratch_shapes=[pltpu.VMEM((Bb, Hp), jnp.float32)],
        ),
        compiler_params=pltpu.CompilerParams(
            # batch axis "parallel" (only used when 2 TCs exist); time axis sequential.
            dimension_semantics=("parallel", "arbitrary"),
            vmem_limit_bytes=vmem_limit,
        ),
    )(gi_all, w_hh_t, b_hn, h0_p)

    out = jnp.transpose(out_p[:T, :B, :H], (1, 0, 2))   # back to batch-first, once
    hn = out_p[T - 1, :B, :H][None]                     # final hidden (in processed time order)
    return out, hn


class GRU:
    """Mirror of spinn.util.blocks.GRU (num_layers=1, unidirectional)."""

    # TODO(synk): bidirectional / num_layers > 1 not implemented (spec default is 1-layer uni).
    def __init__(self, inp_dim, model_dim, num_layers=1, reverse=False,
                 bidirectional=False, key=jax.random.PRNGKey(0)):
        assert num_layers == 1 and not bidirectional
        self.model_dim = model_dim
        self.reverse = reverse
        self.bi = 1
        self.num_layers = num_layers
        H = model_dim // self.bi
        k = 1.0 / jnp.sqrt(H)
        k1, k2, k3, k4 = jax.random.split(key, 4)
        # PyTorch nn.GRU params: weight_ih_l0 (3H, D), weight_hh_l0 (3H, H), biases (3H,)
        self.w_ih = jax.random.uniform(k1, (3 * H, inp_dim), jnp.float32, -k, k)
        self.w_hh = jax.random.uniform(k2, (3 * H, H), jnp.float32, -k, k)
        self.b_ih = jax.random.uniform(k3, (3 * H,), jnp.float32, -k, k)
        self.b_hh = jax.random.uniform(k4, (3 * H,), jnp.float32, -k, k)
        self.hidden = H

    def __call__(self, x, h0=None):
        # x: (batch, seq, inp_dim), batch_first=True
        B, T, _ = x.shape
        H = self.hidden
        if self.reverse:
            x = jnp.flip(x, axis=1)
        if h0 is None:
            h0 = jnp.zeros((self.num_layers * self.bi, B, H), x.dtype)
        output, hn = gru_pallas(x, self.w_ih, self.w_hh, self.b_ih, self.b_hh, h0[0])
        if self.reverse:
            output = jnp.flip(output, axis=1)
        return output, hn


def _gru_reference(x, w_ih, w_hh, b_ih, b_hh, h0):
    """Pure-JAX reference matching torch.nn.GRU semantics (gate order r,z,n)."""
    H = w_hh.shape[1]

    def step(h, x_t):
        gi = x_t @ w_ih.T + b_ih
        gh = h @ w_hh.T + b_hh
        i_r, i_z, i_n = gi[:, :H], gi[:, H:2 * H], gi[:, 2 * H:]
        h_r, h_z, h_n = gh[:, :H], gh[:, H:2 * H], gh[:, 2 * H:]
        r = jax.nn.sigmoid(i_r + h_r)
        z = jax.nn.sigmoid(i_z + h_z)
        n = jnp.tanh(i_n + r * h_n)
        h_new = (1.0 - z) * n + z * h
        return h_new, h_new

    hT, outs = jax.lax.scan(step, h0, jnp.transpose(x, (1, 0, 2)))
    return jnp.transpose(outs, (1, 0, 2)), hT[None]


if __name__ == "__main__":
    batch, seq_len, inp_dim, model_dim = 2, 8, 16, 32

    key = jax.random.PRNGKey(0)
    k_x, k_p = jax.random.split(key)
    x = jax.random.normal(k_x, (batch, seq_len, inp_dim), jnp.float32)

    gru = GRU(inp_dim, model_dim, key=k_p)
    output, hn = gru(x)
    output = jax.block_until_ready(output)
    hn = jax.block_until_ready(hn)

    assert output.shape == (batch, seq_len, model_dim)
    assert hn.shape == (1, batch, model_dim)

    ref_out, ref_hn = _gru_reference(x, gru.w_ih, gru.w_hh, gru.b_ih, gru.b_hh,
                                     jnp.zeros((batch, model_dim), jnp.float32))
    assert jnp.allclose(output, ref_out, atol=1e-4, rtol=1e-4)
    assert jnp.allclose(hn, ref_hn, atol=1e-4, rtol=1e-4)

    print("KERNEL_OK")
</pallas_src>

<mosaic_0001>
module attributes {stable_mosaic.version = 11 : i64} {
  func.func @_gru_rec_kernel(%arg0: i32, %arg1: i32, %arg2: memref<8x8x384xf32, #tpu.memory_space<vmem>>, %arg3: memref<128x384xf32, #tpu.memory_space<vmem>>, %arg4: memref<1x128xf32, #tpu.memory_space<vmem>>, %arg5: memref<8x128xf32, #tpu.memory_space<vmem>>, %arg6: memref<8x8x128xf32, #tpu.memory_space<vmem>>, %arg7: memref<8x128xf32, #tpu.memory_space<vmem>>) attributes {dimension_semantics = [#tpu.dimension_semantics<parallel>, #tpu.dimension_semantics<arbitrary>], iteration_bounds = array<i64: 1, 1>, scalar_prefetch = 0 : i64, scratch_operands = 1 : i64, tpu.core_type = #tpu.core_type<tc>, window_params = [{transform_indices = @transform_0, window_bounds = array<i64: 8, 8, 384>}, {pipeline_mode = #tpu.pipeline_mode<synchronous>, transform_indices = @transform_1, window_bounds = array<i64: 128, 384>}, {pipeline_mode = #tpu.pipeline_mode<synchronous>, transform_indices = @transform_2, window_bounds = array<i64: 1, 128>}, {transform_indices = @transform_3, window_bounds = array<i64: 8, 128>}, {transform_indices = @transform_4, window_bounds = array<i64: 8, 8, 128>}]} {
    %c0_i32 = arith.constant 0 : i32
    %0 = arith.cmpi eq, %arg1, %c0_i32 : i32
    %1 = arith.extui %0 : i1 to i32
    %c0_i32_0 = arith.constant 0 : i32
    %2 = arith.cmpi ne, %1, %c0_i32_0 : i32
    scf.if %2 {
      %c0_72 = arith.constant 0 : index
      %c0_73 = arith.constant 0 : index
      %289 = vector.load %arg5[%c0_72, %c0_73] : memref<8x128xf32, #tpu.memory_space<vmem>>, vector<8x128xf32>
      %c0_74 = arith.constant 0 : index
      %c0_75 = arith.constant 0 : index
      %290 = vector.load %arg7[%c0_74, %c0_75] : memref<8x128xf32, #tpu.memory_space<vmem>>, vector<8x128xf32>
      tpu.vector_store %arg7[%c0_74, %c0_75], %289 {strides = array<i32>} : memref<8x128xf32, #tpu.memory_space<vmem>>, vector<8x128xf32>,
    } else {
    }
    %c0 = arith.constant 0 : index
    %c0_1 = arith.constant 0 : index
    %3 = vector.load %arg3[%c0, %c0_1] : memref<128x384xf32, #tpu.memory_space<vmem>>, vector<128x384xf32>
    %c0_2 = arith.constant 0 : index
    %c0_3 = arith.constant 0 : index
    %4 = vector.load %arg4[%c0_2, %c0_3] : memref<1x128xf32, #tpu.memory_space<vmem>>, vector<1x128xf32>
    %5 = vector.shape_cast %4 : vector<1x128xf32> to vector<1x128xf32>
    %6 = vector.broadcast %5 : vector<1x128xf32> to vector<8x128xf32>
    %c0_4 = arith.constant 0 : index
    %c0_5 = arith.constant 0 : index
    %7 = vector.load %arg7[%c0_4, %c0_5] : memref<8x128xf32, #tpu.memory_space<vmem>>, vector<8x128xf32>
    %c0_i32_6 = arith.constant 0 : i32
    %8 = arith.index_cast %c0_i32_6 : i32 to index
    %c0_7 = arith.constant 0 : index
    %c0_8 = arith.constant 0 : index
    %9 = vector.load %arg2[%8, %c0_7, %c0_8] : memref<8x8x384xf32, #tpu.memory_space<vmem>>, vector<1x8x384xf32>
    %10 = vector.shape_cast %9 : vector<1x8x384xf32> to vector<8x384xf32>
    %cst = arith.constant dense<0.000000e+00> : vector<8x384xf32>
    %11 = tpu.matmul %7, %3, %cst {dimension_numbers = #tpu.dot_dimension_numbers<[1], [0], [0], [1], [0, 0, 1, 1], [], []>} : vector<8x128xf32>, vector<128x384xf32>, vector<8x384xf32> -> vector<8x384xf32>
    %12 = vector.extract_strided_slice %10 {offsets = [0, 0], sizes = [8, 128], strides = [1, 1]} : vector<8x384xf32> to vector<8x128xf32>
    %13 = vector.extract_strided_slice %10 {offsets = [0, 128], sizes = [8, 128], strides = [1, 1]} : vector<8x384xf32> to vector<8x128xf32>
    %14 = vector.extract_strided_slice %10 {offsets = [0, 256], sizes = [8, 128], strides = [1, 1]} : vector<8x384xf32> to vector<8x128xf32>
    %15 = vector.extract_strided_slice %11 {offsets = [0, 0], sizes = [8, 128], strides = [1, 1]} : vector<8x384xf32> to vector<8x128xf32>
    %16 = vector.extract_strided_slice %11 {offsets = [0, 128], sizes = [8, 128], strides = [1, 1]} : vector<8x384xf32> to vector<8x128xf32>
    %17 = vector.extract_strided_slice %11 {offsets = [0, 256], sizes = [8, 128], strides = [1, 1]} : vector<8x384xf32> to vector<8x128xf32>
    %18 = arith.addf %12, %15 : vector<8x128xf32>
    %19 = arith.negf %18 : vector<8x128xf32>
    %20 = math.exp %19 : vector<8x128xf32>
    %cst_9 = arith.constant 1.000000e+00 : f32
    %21 = vector.broadcast %cst_9 : f32 to vector<8x128xf32>
    %22 = arith.addf %21, %20 : vector<8x128xf32>
    %23 = arith.divf %21, %22 : vector<8x128xf32>
    %24 = arith.addf %13, %16 : vector<8x128xf32>
    %25 = arith.negf %24 : vector<8x128xf32>
    %26 = math.exp %25 : vector<8x128xf32>
    %cst_10 = arith.constant 1.000000e+00 : f32
    %27 = vector.broadcast %cst_10 : f32 to vector<8x128xf32>
    %28 = arith.addf %27, %26 : vector<8x128xf32>
    %29 = arith.divf %27, %28 : vector<8x128xf32>
    %30 = arith.addf %17, %6 : vector<8x128xf32>
    %31 = arith.mulf %23, %30 : vector<8x128xf32>
    %32 = arith.addf %14, %31 : vector<8x128xf32>
    %33 = math.tanh %32 : vector<8x128xf32>
    %cst_11 = arith.constant 1.000000e+00 : f32
    %34 = vector.broadcast %cst_11 : f32 to vector<8x128xf32>
    %35 = arith.subf %34, %29 : vector<8x128xf32>
    %36 = arith.mulf %35, %33 : vector<8x128xf32>
    %37 = arith.mulf %29, %7 : vector<8x128xf32>
    %38 = arith.addf %36, %37 : vector<8x128xf32>
    %39 = arith.index_cast %c0_i32_6 : i32 to index
    %c0_12 = arith.constant 0 : index
    %c0_13 = arith.constant 0 : index
    %40 = vector.load %arg6[%39, %c0_12, %c0_13] : memref<8x8x128xf32, #tpu.memory_space<vmem>>, vector<1x8x128xf32>
    %41 = vector.shape_cast %40 : vector<1x8x128xf32> to vector<8x128xf32>
    %42 = vector.shape_cast %38 : vector<8x128xf32> to vector<1x8x128xf32>
    tpu.vector_store %arg6[%39, %c0_12, %c0_13], %42 {strides = array<i32>} : memref<8x8x128xf32, #tpu.memory_space<vmem>>, vector<1x8x128xf32>,
    %c1_i32 = arith.constant 1 : i32
    %43 = arith.index_cast %c1_i32 : i32 to index
    %c0_14 = arith.constant 0 : index
    %c0_15 = arith.constant 0 : index
    %44 = vector.load %arg2[%43, %c0_14, %c0_15] : memref<8x8x384xf32, #tpu.memory_space<vmem>>, vector<1x8x384xf32>
    %45 = vector.shape_cast %44 : vector<1x8x384xf32> to vector<8x384xf32>
    %cst_16 = arith.constant dense<0.000000e+00> : vector<8x384xf32>
    %46 = tpu.matmul %38, %3, %cst_16 {dimension_numbers = #tpu.dot_dimension_numbers<[1], [0], [0], [1], [0, 0, 1, 1], [], []>} : vector<8x128xf32>, vector<128x384xf32>, vector<8x384xf32> -> vector<8x384xf32>
    %47 = vector.extract_strided_slice %45 {offsets = [0, 0], sizes = [8, 128], strides = [1, 1]} : vector<8x384xf32> to vector<8x128xf32>
    %48 = vector.extract_strided_slice %45 {offsets = [0, 128], sizes = [8, 128], strides = [1, 1]} : vector<8x384xf32> to vector<8x128xf32>
    %49 = vector.extract_strided_slice %45 {offsets = [0, 256], sizes = [8, 128], strides = [1, 1]} : vector<8x384xf32> to vector<8x128xf32>
    %50 = vector.extract_strided_slice %46 {offsets = [0, 0], sizes = [8, 128], strides = [1, 1]} : vector<8x384xf32> to vector<8x128xf32>
    %51 = vector.extract_strided_slice %46 {offsets = [0, 128], sizes = [8, 128], strides = [1, 1]} : vector<8x384xf32> to vector<8x128xf32>
    %52 = vector.extract_strided_slice %46 {offsets = [0, 256], sizes = [8, 128], strides = [1, 1]} : vector<8x384xf32> to vector<8x128xf32>
    %53 = arith.addf %47, %50 : vector<8x128xf32>
    %54 = arith.negf %53 : vector<8x128xf32>
    %55 = math.exp %54 : vector<8x128xf32>
    %cst_17 = arith.constant 1.000000e+00 : f32
    %56 = vector.broadcast %cst_17 : f32 to vector<8x128xf32>
    %57 = arith.addf %56, %55 : vector<8x128xf32>
    %58 = arith.divf %56, %57 : vector<8x128xf32>
    %59 = arith.addf %48, %51 : vector<8x128xf32>
    %60 = arith.negf %59 : vector<8x128xf32>
    %61 = math.exp %60 : vector<8x128xf32>
    %cst_18 = arith.constant 1.000000e+00 : f32
    %62 = vector.broadcast %cst_18 : f32 to vector<8x128xf32>
    %63 = arith.addf %62, %61 : vector<8x128xf32>
    %64 = arith.divf %62, %63 : vector<8x128xf32>
    %65 = arith.addf %52, %6 : vector<8x128xf32>
    %66 = arith.mulf %58, %65 : vector<8x128xf32>
    %67 = arith.addf %49, %66 : vector<8x128xf32>
    %68 = math.tanh %67 : vector<8x128xf32>
    %cst_19 = arith.constant 1.000000e+00 : f32
    %69 = vector.broadcast %cst_19 : f32 to vector<8x128xf32>
    %70 = arith.subf %69, %64 : vector<8x128xf32>
    %71 = arith.mulf %70, %68 : vector<8x128xf32>
    %72 = arith.mulf %64, %38 : vector<8x128xf32>
    %73 = arith.addf %71, %72 : vector<8x128xf32>
    %74 = arith.index_cast %c1_i32 : i32 to index
    %c0_20 = arith.constant 0 : index
    %c0_21 = arith.constant 0 : index
    %75 = vector.load %arg6[%74, %c0_20, %c0_21] : memref<8x8x128xf32, #tpu.memory_space<vmem>>, vector<1x8x128xf32>
    %76 = vector.shape_cast %75 : vector<1x8x128xf32> to vector<8x128xf32>
    %77 = vector.shape_cast %73 : vector<8x128xf32> to vector<1x8x128xf32>
    tpu.vector_store %arg6[%74, %c0_20, %c0_21], %77 {strides = array<i32>} : memref<8x8x128xf32, #tpu.memory_space<vmem>>, vector<1x8x128xf32>,
    %c2_i32 = arith.constant 2 : i32
    %78 = arith.index_cast %c2_i32 : i32 to index
    %c0_22 = arith.constant 0 : index
    %c0_23 = arith.constant 0 : index
    %79 = vector.load %arg2[%78, %c0_22, %c0_23] : memref<8x8x384xf32, #tpu.memory_space<vmem>>, vector<1x8x384xf32>
    %80 = vector.shape_cast %79 : vector<1x8x384xf32> to vector<8x384xf32>
    %cst_24 = arith.constant dense<0.000000e+00> : vector<8x384xf32>
    %81 = tpu.matmul %73, %3, %cst_24 {dimension_numbers = #tpu.dot_dimension_numbers<[1], [0], [0], [1], [0, 0, 1, 1], [], []>} : vector<8x128xf32>, vector<128x384xf32>, vector<8x384xf32> -> vector<8x384xf32>
    %82 = vector.extract_strided_slice %80 {offsets = [0, 0], sizes = [8, 128], strides = [1, 1]} : vector<8x384xf32> to vector<8x128xf32>
    %83 = vector.extract_strided_slice %80 {offsets = [0, 128], sizes = [8, 128], strides = [1, 1]} : vector<8x384xf32> to vector<8x128xf32>
    %84 = vector.extract_strided_slice %80 {offsets = [0, 256], sizes = [8, 128], strides = [1, 1]} : vector<8x384xf32> to vector<8x128xf32>
    %85 = vector.extract_strided_slice %81 {offsets = [0, 0], sizes = [8, 128], strides = [1, 1]} : vector<8x384xf32> to vector<8x128xf32>
    %86 = vector.extract_strided_slice %81 {offsets = [0, 128], sizes = [8, 128], strides = [1, 1]} : vector<8x384xf32> to vector<8x128xf32>
    %87 = vector.extract_strided_slice %81 {offsets = [0, 256], sizes = [8, 128], strides = [1, 1]} : vector<8x384xf32> to vector<8x128xf32>
    %88 = arith.addf %82, %85 : vector<8x128xf32>
    %89 = arith.negf %88 : vector<8x128xf32>
    %90 = math.exp %89 : vector<8x128xf32>
    %cst_25 = arith.constant 1.000000e+00 : f32
    %91 = vector.broadcast %cst_25 : f32 to vector<8x128xf32>
    %92 = arith.addf %91, %90 : vector<8x128xf32>
    %93 = arith.divf %91, %92 : vector<8x128xf32>
    %94 = arith.addf %83, %86 : vector<8x128xf32>
    %95 = arith.negf %94 : vector<8x128xf32>
    %96 = math.exp %95 : vector<8x128xf32>
    %cst_26 = arith.constant 1.000000e+00 : f32
    %97 = vector.broadcast %cst_26 : f32 to vector<8x128xf32>
    %98 = arith.addf %97, %96 : vector<8x128xf32>
    %99 = arith.divf %97, %98 : vector<8x128xf32>
    %100 = arith.addf %87, %6 : vector<8x128xf32>
    %101 = arith.mulf %93, %100 : vector<8x128xf32>
    %102 = arith.addf %84, %101 : vector<8x128xf32>
    %103 = math.tanh %102 : vector<8x128xf32>
    %cst_27 = arith.constant 1.000000e+00 : f32
    %104 = vector.broadcast %cst_27 : f32 to vector<8x128xf32>
    %105 = arith.subf %104, %99 : vector<8x128xf32>
    %106 = arith.mulf %105, %103 : vector<8x128xf32>
    %107 = arith.mulf %99, %73 : vector<8x128xf32>
    %108 = arith.addf %106, %107 : vector<8x128xf32>
    %109 = arith.index_cast %c2_i32 : i32 to index
    %c0_28 = arith.constant 0 : index
    %c0_29 = arith.constant 0 : index
    %110 = vector.load %arg6[%109, %c0_28, %c0_29] : memref<8x8x128xf32, #tpu.memory_space<vmem>>, vector<1x8x128xf32>
    %111 = vector.shape_cast %110 : vector<1x8x128xf32> to vector<8x128xf32>
    %112 = vector.shape_cast %108 : vector<8x128xf32> to vector<1x8x128xf32>
    tpu.vector_store %arg6[%109, %c0_28, %c0_29], %112 {strides = array<i32>} : memref<8x8x128xf32, #tpu.memory_space<vmem>>, vector<1x8x128xf32>,
    %c3_i32 = arith.constant 3 : i32
    %113 = arith.index_cast %c3_i32 : i32 to index
    %c0_30 = arith.constant 0 : index
    %c0_31 = arith.constant 0 : index
    %114 = vector.load %arg2[%113, %c0_30, %c0_31] : memref<8x8x384xf32, #tpu.memory_space<vmem>>, vector<1x8x384xf32>
    %115 = vector.shape_cast %114 : vector<1x8x384xf32> to vector<8x384xf32>
    %cst_32 = arith.constant dense<0.000000e+00> : vector<8x384xf32>
    %116 = tpu.matmul %108, %3, %cst_32 {dimension_numbers = #tpu.dot_dimension_numbers<[1], [0], [0], [1], [0, 0, 1, 1], [], []>} : vector<8x128xf32>, vector<128x384xf32>, vector<8x384xf32> -> vector<8x384xf32>
    %117 = vector.extract_strided_slice %115 {offsets = [0, 0], sizes = [8, 128], strides = [1, 1]} : vector<8x384xf32> to vector<8x128xf32>
    %118 = vector.extract_strided_slice %115 {offsets = [0, 128], sizes = [8, 128], strides = [1, 1]} : vector<8x384xf32> to vector<8x128xf32>
    %119 = vector.extract_strided_slice %115 {offsets = [0, 256], sizes = [8, 128], strides = [1, 1]} : vector<8x384xf32> to vector<8x128xf32>
    %120 = vector.extract_strided_slice %116 {offsets = [0, 0], sizes = [8, 128], strides = [1, 1]} : vector<8x384xf32> to vector<8x128xf32>
    %121 = vector.extract_strided_slice %116 {offsets = [0, 128], sizes = [8, 128], strides = [1, 1]} : vector<8x384xf32> to vector<8x128xf32>
    %122 = vector.extract_strided_slice %116 {offsets = [0, 256], sizes = [8, 128], strides = [1, 1]} : vector<8x384xf32> to vector<8x128xf32>
    %123 = arith.addf %117, %120 : vector<8x128xf32>
    %124 = arith.negf %123 : vector<8x128xf32>
    %125 = math.exp %124 : vector<8x128xf32>
    %cst_33 = arith.constant 1.000000e+00 : f32
    %126 = vector.broadcast %cst_33 : f32 to vector<8x128xf32>
    %127 = arith.addf %126, %125 : vector<8x128xf32>
    %128 = arith.divf %126, %127 : vector<8x128xf32>
    %129 = arith.addf %118, %121 : vector<8x128xf32>
    %130 = arith.negf %129 : vector<8x128xf32>
    %131 = math.exp %130 : vector<8x128xf32>
    %cst_34 = arith.constant 1.000000e+00 : f32
    %132 = vector.broadcast %cst_34 : f32 to vector<8x128xf32>
    %133 = arith.addf %132, %131 : vector<8x128xf32>
    %134 = arith.divf %132, %133 : vector<8x128xf32>
    %135 = arith.addf %122, %6 : vector<8x128xf32>
    %136 = arith.mulf %128, %135 : vector<8x128xf32>
    %137 = arith.addf %119, %136 : vector<8x128xf32>
    %138 = math.tanh %137 : vector<8x128xf32>
    %cst_35 = arith.constant 1.000000e+00 : f32
    %139 = vector.broadcast %cst_35 : f32 to vector<8x128xf32>
    %140 = arith.subf %139, %134 : vector<8x128xf32>
    %141 = arith.mulf %140, %138 : vector<8x128xf32>
    %142 = arith.mulf %134, %108 : vector<8x128xf32>
    %143 = arith.addf %141, %142 : vector<8x128xf32>
    %144 = arith.index_cast %c3_i32 : i32 to index
    %c0_36 = arith.constant 0 : index
    %c0_37 = arith.constant 0 : index
    %145 = vector.load %arg6[%144, %c0_36, %c0_37] : memref<8x8x128xf32, #tpu.memory_space<vmem>>, vector<1x8x128xf32>
    %146 = vector.shape_cast %145 : vector<1x8x128xf32> to vector<8x128xf32>
    %147 = vector.shape_cast %143 : vector<8x128xf32> to vector<1x8x128xf32>
    tpu.vector_store %arg6[%144, %c0_36, %c0_37], %147 {strides = array<i32>} : memref<8x8x128xf32, #tpu.memory_space<vmem>>, vector<1x8x128xf32>,
    %c4_i32 = arith.constant 4 : i32
    %148 = arith.index_cast %c4_i32 : i32 to index
    %c0_38 = arith.constant 0 : index
    %c0_39 = arith.constant 0 : index
    %149 = vector.load %arg2[%148, %c0_38, %c0_39] : memref<8x8x384xf32, #tpu.memory_space<vmem>>, vector<1x8x384xf32>
    %150 = vector.shape_cast %149 : vector<1x8x384xf32> to vector<8x384xf32>
    %cst_40 = arith.constant dense<0.000000e+00> : vector<8x384xf32>
    %151 = tpu.matmul %143, %3, %cst_40 {dimension_numbers = #tpu.dot_dimension_numbers<[1], [0], [0], [1], [0, 0, 1, 1], [], []>} : vector<8x128xf32>, vector<128x384xf32>, vector<8x384xf32> -> vector<8x384xf32>
    %152 = vector.extract_strided_slice %150 {offsets = [0, 0], sizes = [8, 128], strides = [1, 1]} : vector<8x384xf32> to vector<8x128xf32>
    %153 = vector.extract_strided_slice %150 {offsets = [0, 128], sizes = [8, 128], strides = [1, 1]} : vector<8x384xf32> to vector<8x128xf32>
    %154 = vector.extract_strided_slice %150 {offsets = [0, 256], sizes = [8, 128], strides = [1, 1]} : vector<8x384xf32> to vector<8x128xf32>
    %155 = vector.extract_strided_slice %151 {offsets = [0, 0], sizes = [8, 128], strides = [1, 1]} : vector<8x384xf32> to vector<8x128xf32>
    %156 = vector.extract_strided_slice %151 {offsets = [0, 128], sizes = [8, 128], strides = [1, 1]} : vector<8x384xf32> to vector<8x128xf32>
    %157 = vector.extract_strided_slice %151 {offsets = [0, 256], sizes = [8, 128], strides = [1, 1]} : vector<8x384xf32> to vector<8x128xf32>
    %158 = arith.addf %152, %155 : vector<8x128xf32>
    %159 = arith.negf %158 : vector<8x128xf32>
    %160 = math.exp %159 : vector<8x128xf32>
    %cst_41 = arith.constant 1.000000e+00 : f32
    %161 = vector.broadcast %cst_41 : f32 to vector<8x128xf32>
    %162 = arith.addf %161, %160 : vector<8x128xf32>
    %163 = arith.divf %161, %162 : vector<8x128xf32>
    %164 = arith.addf %153, %156 : vector<8x128xf32>
    %165 = arith.negf %164 : vector<8x128xf32>
    %166 = math.exp %165 : vector<8x128xf32>
    %cst_42 = arith.constant 1.000000e+00 : f32
    %167 = vector.broadcast %cst_42 : f32 to vector<8x128xf32>
    %168 = arith.addf %167, %166 : vector<8x128xf32>
    %169 = arith.divf %167, %168 : vector<8x128xf32>
    %170 = arith.addf %157, %6 : vector<8x128xf32>
    %171 = arith.mulf %163, %170 : vector<8x128xf32>
    %172 = arith.addf %154, %171 : vector<8x128xf32>
    %173 = math.tanh %172 : vector<8x128xf32>
    %cst_43 = arith.constant 1.000000e+00 : f32
    %174 = vector.broadcast %cst_43 : f32 to vector<8x128xf32>
    %175 = arith.subf %174, %169 : vector<8x128xf32>
    %176 = arith.mulf %175, %173 : vector<8x128xf32>
    %177 = arith.mulf %169, %143 : vector<8x128xf32>
    %178 = arith.addf %176, %177 : vector<8x128xf32>
    %179 = arith.index_cast %c4_i32 : i32 to index
    %c0_44 = arith.constant 0 : index
    %c0_45 = arith.constant 0 : index
    %180 = vector.load %arg6[%179, %c0_44, %c0_45] : memref<8x8x128xf32, #tpu.memory_space<vmem>>, vector<1x8x128xf32>
    %181 = vector.shape_cast %180 : vector<1x8x128xf32> to vector<8x128xf32>
    %182 = vector.shape_cast %178 : vector<8x128xf32> to vector<1x8x128xf32>
    tpu.vector_store %arg6[%179, %c0_44, %c0_45], %182 {strides = array<i32>} : memref<8x8x128xf32, #tpu.memory_space<vmem>>, vector<1x8x128xf32>,
    %c5_i32 = arith.constant 5 : i32
    %183 = arith.index_cast %c5_i32 : i32 to index
    %c0_46 = arith.constant 0 : index
    %c0_47 = arith.constant 0 : index
    %184 = vector.load %arg2[%183, %c0_46, %c0_47] : memref<8x8x384xf32, #tpu.memory_space<vmem>>, vector<1x8x384xf32>
    %185 = vector.shape_cast %184 : vector<1x8x384xf32> to vector<8x384xf32>
    %cst_48 = arith.constant dense<0.000000e+00> : vector<8x384xf32>
    %186 = tpu.matmul %178, %3, %cst_48 {dimension_numbers = #tpu.dot_dimension_numbers<[1], [0], [0], [1], [0, 0, 1, 1], [], []>} : vector<8x128xf32>, vector<128x384xf32>, vector<8x384xf32> -> vector<8x384xf32>
    %187 = vector.extract_strided_slice %185 {offsets = [0, 0], sizes = [8, 128], strides = [1, 1]} : vector<8x384xf32> to vector<8x128xf32>
    %188 = vector.extract_strided_slice %185 {offsets = [0, 128], sizes = [8, 128], strides = [1, 1]} : vector<8x384xf32> to vector<8x128xf32>
    %189 = vector.extract_strided_slice %185 {offsets = [0, 256], sizes = [8, 128], strides = [1, 1]} : vector<8x384xf32> to vector<8x128xf32>
    %190 = vector.extract_strided_slice %186 {offsets = [0, 0], sizes = [8, 128], strides = [1, 1]} : vector<8x384xf32> to vector<8x128xf32>
    %191 = vector.extract_strided_slice %186 {offsets = [0, 128], sizes = [8, 128], strides = [1, 1]} : vector<8x384xf32> to vector<8x128xf32>
    %192 = vector.extract_strided_slice %186 {offsets = [0, 256], sizes = [8, 128], strides = [1, 1]} : vector<8x384xf32> to vector<8x128xf32>
    %193 = arith.addf %187, %190 : vector<8x128xf32>
    %194 = arith.negf %193 : vector<8x128xf32>
    %195 = math.exp %194 : vector<8x128xf32>
    %cst_49 = arith.constant 1.000000e+00 : f32
    %196 = vector.broadcast %cst_49 : f32 to vector<8x128xf32>
    %197 = arith.addf %196, %195 : vector<8x128xf32>
    %198 = arith.divf %196, %197 : vector<8x128xf32>
    %199 = arith.addf %188, %191 : vector<8x128xf32>
    %200 = arith.negf %199 : vector<8x128xf32>
    %201 = math.exp %200 : vector<8x128xf32>
    %cst_50 = arith.constant 1.000000e+00 : f32
    %202 = vector.broadcast %cst_50 : f32 to vector<8x128xf32>
    %203 = arith.addf %202, %201 : vector<8x128xf32>
    %204 = arith.divf %202, %203 : vector<8x128xf32>
    %205 = arith.addf %192, %6 : vector<8x128xf32>
    %206 = arith.mulf %198, %205 : vector<8x128xf32>
    %207 = arith.addf %189, %206 : vector<8x128xf32>
    %208 = math.tanh %207 : vector<8x128xf32>
    %cst_51 = arith.constant 1.000000e+00 : f32
    %209 = vector.broadcast %cst_51 : f32 to vector<8x128xf32>
    %210 = arith.subf %209, %204 : vector<8x128xf32>
    %211 = arith.mulf %210, %208 : vector<8x128xf32>
    %212 = arith.mulf %204, %178 : vector<8x128xf32>
    %213 = arith.addf %211, %212 : vector<8x128xf32>
    %214 = arith.index_cast %c5_i32 : i32 to index
    %c0_52 = arith.constant 0 : index
    %c0_53 = arith.constant 0 : index
    %215 = vector.load %arg6[%214, %c0_52, %c0_53] : memref<8x8x128xf32, #tpu.memory_space<vmem>>, vector<1x8x128xf32>
    %216 = vector.shape_cast %215 : vector<1x8x128xf32> to vector<8x128xf32>
    %217 = vector.shape_cast %213 : vector<8x128xf32> to vector<1x8x128xf32>
    tpu.vector_store %arg6[%214, %c0_52, %c0_53], %217 {strides = array<i32>} : memref<8x8x128xf32, #tpu.memory_space<vmem>>, vector<1x8x128xf32>,
    %c6_i32 = arith.constant 6 : i32
    %218 = arith.index_cast %c6_i32 : i32 to index
    %c0_54 = arith.constant 0 : index
    %c0_55 = arith.constant 0 : index
    %219 = vector.load %arg2[%218, %c0_54, %c0_55] : memref<8x8x384xf32, #tpu.memory_space<vmem>>, vector<1x8x384xf32>
    %220 = vector.shape_cast %219 : vector<1x8x384xf32> to vector<8x384xf32>
    %cst_56 = arith.constant dense<0.000000e+00> : vector<8x384xf32>
    %221 = tpu.matmul %213, %3, %cst_56 {dimension_numbers = #tpu.dot_dimension_numbers<[1], [0], [0], [1], [0, 0, 1, 1], [], []>} : vector<8x128xf32>, vector<128x384xf32>, vector<8x384xf32> -> vector<8x384xf32>
    %222 = vector.extract_strided_slice %220 {offsets = [0, 0], sizes = [8, 128], strides = [1, 1]} : vector<8x384xf32> to vector<8x128xf32>
    %223 = vector.extract_strided_slice %220 {offsets = [0, 128], sizes = [8, 128], strides = [1, 1]} : vector<8x384xf32> to vector<8x128xf32>
    %224 = vector.extract_strided_slice %220 {offsets = [0, 256], sizes = [8, 128], strides = [1, 1]} : vector<8x384xf32> to vector<8x128xf32>
    %225 = vector.extract_strided_slice %221 {offsets = [0, 0], sizes = [8, 128], strides = [1, 1]} : vector<8x384xf32> to vector<8x128xf32>
    %226 = vector.extract_strided_slice %221 {offsets = [0, 128], sizes = [8, 128], strides = [1, 1]} : vector<8x384xf32> to vector<8x128xf32>
    %227 = vector.extract_strided_slice %221 {offsets = [0, 256], sizes = [8, 128], strides = [1, 1]} : vector<8x384xf32> to vector<8x128xf32>
    %228 = arith.addf %222, %225 : vector<8x128xf32>
    %229 = arith.negf %228 : vector<8x128xf32>
    %230 = math.exp %229 : vector<8x128xf32>
    %cst_57 = arith.constant 1.000000e+00 : f32
    %231 = vector.broadcast %cst_57 : f32 to vector<8x128xf32>
    %232 = arith.addf %231, %230 : vector<8x128xf32>
    %233 = arith.divf %231, %232 : vector<8x128xf32>
    %234 = arith.addf %223, %226 : vector<8x128xf32>
    %235 = arith.negf %234 : vector<8x128xf32>
    %236 = math.exp %235 : vector<8x128xf32>
    %cst_58 = arith.constant 1.000000e+00 : f32
    %237 = vector.broadcast %cst_58 : f32 to vector<8x128xf32>
    %238 = arith.addf %237, %236 : vector<8x128xf32>
    %239 = arith.divf %237, %238 : vector<8x128xf32>
    %240 = arith.addf %227, %6 : vector<8x128xf32>
    %241 = arith.mulf %233, %240 : vector<8x128xf32>
    %242 = arith.addf %224, %241 : vector<8x128xf32>
    %243 = math.tanh %242 : vector<8x128xf32>
    %cst_59 = arith.constant 1.000000e+00 : f32
    %244 = vector.broadcast %cst_59 : f32 to vector<8x128xf32>
    %245 = arith.subf %244, %239 : vector<8x128xf32>
    %246 = arith.mulf %245, %243 : vector<8x128xf32>
    %247 = arith.mulf %239, %213 : vector<8x128xf32>
    %248 = arith.addf %246, %247 : vector<8x128xf32>
    %249 = arith.index_cast %c6_i32 : i32 to index
    %c0_60 = arith.constant 0 : index
    %c0_61 = arith.constant 0 : index
    %250 = vector.load %arg6[%249, %c0_60, %c0_61] : memref<8x8x128xf32, #tpu.memory_space<vmem>>, vector<1x8x128xf32>
    %251 = vector.shape_cast %250 : vector<1x8x128xf32> to vector<8x128xf32>
    %252 = vector.shape_cast %248 : vector<8x128xf32> to vector<1x8x128xf32>
    tpu.vector_store %arg6[%249, %c0_60, %c0_61], %252 {strides = array<i32>} : memref<8x8x128xf32, #tpu.memory_space<vmem>>, vector<1x8x128xf32>,
    %c7_i32 = arith.constant 7 : i32
    %253 = arith.index_cast %c7_i32 : i32 to index
    %c0_62 = arith.constant 0 : index
    %c0_63 = arith.constant 0 : index
    %254 = vector.load %arg2[%253, %c0_62, %c0_63] : memref<8x8x384xf32, #tpu.memory_space<vmem>>, vector<1x8x384xf32>
    %255 = vector.shape_cast %254 : vector<1x8x384xf32> to vector<8x384xf32>
    %cst_64 = arith.constant dense<0.000000e+00> : vector<8x384xf32>
    %256 = tpu.matmul %248, %3, %cst_64 {dimension_numbers = #tpu.dot_dimension_numbers<[1], [0], [0], [1], [0, 0, 1, 1], [], []>} : vector<8x128xf32>, vector<128x384xf32>, vector<8x384xf32> -> vector<8x384xf32>
    %257 = vector.extract_strided_slice %255 {offsets = [0, 0], sizes = [8, 128], strides = [1, 1]} : vector<8x384xf32> to vector<8x128xf32>
    %258 = vector.extract_strided_slice %255 {offsets = [0, 128], sizes = [8, 128], strides = [1, 1]} : vector<8x384xf32> to vector<8x128xf32>
    %259 = vector.extract_strided_slice %255 {offsets = [0, 256], sizes = [8, 128], strides = [1, 1]} : vector<8x384xf32> to vector<8x128xf32>
    %260 = vector.extract_strided_slice %256 {offsets = [0, 0], sizes = [8, 128], strides = [1, 1]} : vector<8x384xf32> to vector<8x128xf32>
    %261 = vector.extract_strided_slice %256 {offsets = [0, 128], sizes = [8, 128], strides = [1, 1]} : vector<8x384xf32> to vector<8x128xf32>
    %262 = vector.extract_strided_slice %256 {offsets = [0, 256], sizes = [8, 128], strides = [1, 1]} : vector<8x384xf32> to vector<8x128xf32>
    %263 = arith.addf %257, %260 : vector<8x128xf32>
    %264 = arith.negf %263 : vector<8x128xf32>
    %265 = math.exp %264 : vector<8x128xf32>
    %cst_65 = arith.constant 1.000000e+00 : f32
    %266 = vector.broadcast %cst_65 : f32 to vector<8x128xf32>
    %267 = arith.addf %266, %265 : vector<8x128xf32>
    %268 = arith.divf %266, %267 : vector<8x128xf32>
    %269 = arith.addf %258, %261 : vector<8x128xf32>
    %270 = arith.negf %269 : vector<8x128xf32>
    %271 = math.exp %270 : vector<8x128xf32>
    %cst_66 = arith.constant 1.000000e+00 : f32
    %272 = vector.broadcast %cst_66 : f32 to vector<8x128xf32>
    %273 = arith.addf %272, %271 : vector<8x128xf32>
    %274 = arith.divf %272, %273 : vector<8x128xf32>
    %275 = arith.addf %262, %6 : vector<8x128xf32>
    %276 = arith.mulf %268, %275 : vector<8x128xf32>
    %277 = arith.addf %259, %276 : vector<8x128xf32>
    %278 = math.tanh %277 : vector<8x128xf32>
    %cst_67 = arith.constant 1.000000e+00 : f32
    %279 = vector.broadcast %cst_67 : f32 to vector<8x128xf32>
    %280 = arith.subf %279, %274 : vector<8x128xf32>
    %281 = arith.mulf %280, %278 : vector<8x128xf32>
    %282 = arith.mulf %274, %248 : vector<8x128xf32>
    %283 = arith.addf %281, %282 : vector<8x128xf32>
    %284 = arith.index_cast %c7_i32 : i32 to index
    %c0_68 = arith.constant 0 : index
    %c0_69 = arith.constant 0 : index
    %285 = vector.load %arg6[%284, %c0_68, %c0_69] : memref<8x8x128xf32, #tpu.memory_space<vmem>>, vector<1x8x128xf32>
    %286 = vector.shape_cast %285 : vector<1x8x128xf32> to vector<8x128xf32>
    %287 = vector.shape_cast %283 : vector<8x128xf32> to vector<1x8x128xf32>
    tpu.vector_store %arg6[%284, %c0_68, %c0_69], %287 {strides = array<i32>} : memref<8x8x128xf32, #tpu.memory_space<vmem>>, vector<1x8x128xf32>,
    %c8_i32 = arith.constant 8 : i32
    %c0_70 = arith.constant 0 : index
    %c0_71 = arith.constant 0 : index
    %288 = vector.load %arg7[%c0_70, %c0_71] : memref<8x128xf32, #tpu.memory_space<vmem>>, vector<8x128xf32>
    tpu.vector_store %arg7[%c0_70, %c0_71], %283 {strides = array<i32>} : memref<8x128xf32, #tpu.memory_space<vmem>>, vector<8x128xf32>,
    return
  }
  func.func @transform_0(%arg0: i32, %arg1: i32) -> (i32, i32, i32) {
    %c0_i32 = arith.constant 0 : i32
    %c0_i32_0 = arith.constant 0 : i32
    return %arg1, %arg0, %c0_i32 : i32, i32, i32
  }
  func.func @transform_1(%arg0: i32, %arg1: i32) -> (i32, i32) {
    %c0_i32 = arith.constant 0 : i32
    %c0_i32_0 = arith.constant 0 : i32
    %c0_i32_1 = arith.constant 0 : i32
    return %c0_i32, %c0_i32_0 : i32, i32
  }
  func.func @transform_2(%arg0: i32, %arg1: i32) -> (i32, i32) {
    %c0_i32 = arith.constant 0 : i32
    %c0_i32_0 = arith.constant 0 : i32
    %c0_i32_1 = arith.constant 0 : i32
    return %c0_i32, %c0_i32_0 : i32, i32
  }
  func.func @transform_3(%arg0: i32, %arg1: i32) -> (i32, i32) {
    %c0_i32 = arith.constant 0 : i32
    %c0_i32_0 = arith.constant 0 : i32
    return %arg0, %c0_i32 : i32, i32
  }
  func.func @transform_4(%arg0: i32, %arg1: i32) -> (i32, i32, i32) {
    %c0_i32 = arith.constant 0 : i32
    %c0_i32_0 = arith.constant 0 : i32
    return %arg1, %arg0, %c0_i32 : i32, i32, i32
  }
}

</mosaic_0001>

<bundles_post_ra>
// kernel: tpu_custom_call.1
= control target key start
LH: loop header
LB: loop body
LE: loop exit
PB: predicated region body
PF: predicated region fallthrough
CT: control target
= control target key end

     0   :  { %9 = vsyncpa [#allocation4], 0  ;;  %s1893_s0 = inlined_call_operand.hbm [shape: f32[8,8,384], index: 0, kind: input, shape index: {}]   ;;  %s1894_s1 = inlined_call_operand.hbm [shape: f32[128,384], index: 1, kind: input, shape index: {}]   ;;  %s1895_s2 = inlined_call_operand.vmem [shape: f32[1,128], index: 2, kind: input, shape index: {}]   ;;  %s1896_s3 = inlined_call_operand.hbm [shape: f32[8,128], index: 3, kind: input, shape index: {}]   ;;  %s1897_s4 = inlined_call_operand.hbm [shape: f32[8,8,128], index: 4, kind: output, shape index: {}]  }
   0x1   :  { %10 = vsyncpa [#allocation7], 0 }
   0x2   :  { %11 = vsyncpa [#allocation5], 0  ;;  %s29_s17 = sshll.u32 %s1894_s1, 4  ;;  %s1309_s18 = smov [#allocation6]   ;;  %s30_s17 = int_to_ptr.hbm [resolvable:$true] %s29_s17 }
   0x3   :  { %s31_s19 = sshll.u32 %s1309_s18, 4  ;;  %s16_s22 = sshll.u32 %s1893_s0, 4  ;;  %s32_s19 = int_to_ptr.vmem [resolvable:$true] %s31_s19  ;;  %s17_s22 = int_to_ptr.hbm [resolvable:$true] %s16_s22 }
   0x4   :  { %s1310_s23 = smov 384   ;;  %s1311_s24 = smov 24  }
   0x5   :  { %37 = dma.hbm_to_vmem [thread:$0]  %s30_s17, 6144, %s32_s19, [#allocation7], %s1310_s23, %s1310_s23, %s1311_s24  }
   0x6   :  { %s1312_s25 = smov [#allocation3]   ;;  %s45_s29 = sshll.u32 %s1896_s3, 4  ;;  %s46_s29 = int_to_ptr.hbm [resolvable:$true] %s45_s29 }
   0x7   :  { %s18_s26 = sshll.u32 %s1312_s25, 4  ;;  %s1313_s1 = smov [#allocation8]   ;;  %s19_s26 = int_to_ptr.vmem [resolvable:$true] %s18_s26 }
   0x8   :  { %24 = dma.hbm_to_vmem [thread:$0]  %s17_s22, 3072, %s19_s26, [#allocation4], %s1310_s23, %s1310_s23, %s1311_s24  }
   0x9   :  { %s47_s30 = sshll.u32 %s1313_s1, 4  ;;  %s48_s30 = int_to_ptr.vmem [resolvable:$true] %s47_s30 }
   0xa   :  { %50 = dma.hbm_to_vmem [thread:$0]  %s46_s29, 128, %s48_s30, [#allocation7]  }
   0xb   :  { %1303 = dma.done.wait [#allocation4], 3072  }
   0xc   :  { %1304 = vsyncadd [#allocation4], 4294964224 }
   0xd   :  { %1305 = dma.done.wait [#allocation7], 6272  }
   0xe   :  { %1306 = vsyncadd [#allocation7], 4294961024  ;;  %v1351_v0 = vld [vmem:[#allocation6 + $0x168] sm:$0xff]  ;;  %v1353_v1 = vld [vmem:[#allocation6 + $0x170] sm:$0xff]  ;;  %s1039_s10 = sshll.u32 %s1897_s4, 4  ;;  %s1315_s11 = smov 128   ;;  %s1040_s10 = int_to_ptr.hbm [resolvable:$true] %s1039_s10 }
   0xf   :  { %v1355_v2 = vld [vmem:[#allocation6 + $0x150] sm:$0xff]  ;;  %125 = vmatpush.msra.mxu0 %v1351_v0  ;;  %145 = vmatpush.msra.mxu1 %v1353_v1  ;;  %v1359_v3 = vld [vmem:[#allocation6 + $0x158] sm:$0xff]  ;;  %v1363_v5 = vld [vmem:[#allocation6 + $0x140] sm:$0xff]  ;;  %s1316_s12 = smov 8  }
  0x10   :  { %v1361_v4 = vld [vmem:[#allocation6 + $0x138] sm:$0xff]  ;;  %238 = vmatpush.msra.mxu3 %v1351_v0  ;;  %v1368_v6 = vld [vmem:[#allocation6 + $0x120] sm:$0xff]  ;;  %v1370_v7 = vld [vmem:[#allocation6 + $0x128] sm:$0xff] }
  0x11   :  { %126 = vmatpush.msra.mxu0 %v1355_v2  ;;  %146 = vmatpush.msra.mxu1 %v1359_v3  ;;  %v1375_v8 = vld [vmem:[#allocation6 + $0x108] sm:$0xff]  ;;  %v1377_v9 = vld [vmem:[#allocation6 + $0x110] sm:$0xff]  ;;  %v1384_v11 = vld [vmem:[#allocation6 + $0xf8] sm:$0xff] }
  0x12   :  { %239 = vmatpush.msra.mxu3 %v1355_v2  ;;  %v1382_v10 = vld [vmem:[#allocation6 + $0xf0] sm:$0xff]  ;;  %v1386_v12 = vld [vmem:[#allocation6 + $0x178] sm:$0xff]  ;;  %v1391_v13 = vld [vmem:[#allocation6 + $0x160] sm:$0xff] }
  0x13   :  { %127 = vmatpush.msra.mxu0 %v1361_v4  ;;  %147 = vmatpush.msra.mxu1 %v1363_v5  ;;  %v1393_v14 = vld [vmem:[#allocation6 + $0xd8] sm:$0xff]  ;;  %v1395_v15 = vld [vmem:[#allocation6 + $0xe0] sm:$0xff]  ;;  %v1401_v16 = vld [vmem:[#allocation6 + $0x148] sm:$0xff] }
  0x14   :  { %240 = vmatpush.msra.mxu3 %v1361_v4  ;;  %165 = vmatpush.msra.mxu2 %v1386_v12  ;;  %v1403_v17 = vld [vmem:[#allocation6 + $0xc0] sm:$0xff]  ;;  %v1405_v18 = vld [vmem:[#allocation6 + $0xc8] sm:$0xff]  ;;  %v1411_v19 = vld [vmem:[#allocation6 + $0x130] sm:$0xff] }
  0x15   :  { %128 = vmatpush.msra.mxu0 %v1368_v6  ;;  %148 = vmatpush.msra.mxu1 %v1370_v7  ;;  %v1413_v20 = vld [vmem:[#allocation6 + $0xa8] sm:$0xff]  ;;  %v1415_v21 = vld [vmem:[#allocation6 + $0xb0] sm:$0xff]  ;;  %v1421_v22 = vld [vmem:[#allocation6 + $0x118] sm:$0xff] }
  0x16   :  { %241 = vmatpush.msra.mxu3 %v1368_v6  ;;  %166 = vmatpush.msra.mxu2 %v1391_v13  ;;  %v1423_v23 = vld [vmem:[#allocation6 + $0x90] sm:$0xff]  ;;  %v1425_v24 = vld [vmem:[#allocation6 + $0x98] sm:$0xff]  ;;  %v1431_v25 = vld [vmem:[#allocation6 + $0x100] sm:$0xff] }
  0x17   :  { %129 = vmatpush.msra.mxu0 %v1375_v8  ;;  %149 = vmatpush.msra.mxu1 %v1377_v9  ;;  %v1433_v26 = vld [vmem:[#allocation6 + $0x78] sm:$0xff]  ;;  %v1435_v27 = vld [vmem:[#allocation6 + $0x80] sm:$0xff]  ;;  %v1441_v28 = vld [vmem:[#allocation6 + $0xe8] sm:$0xff] }
  0x18   :  { %242 = vmatpush.msra.mxu3 %v1375_v8  ;;  %167 = vmatpush.msra.mxu2 %v1401_v16  ;;  %v1443_v29 = vld [vmem:[#allocation6 + $0x60] sm:$0xff]  ;;  %v1445_v30 = vld [vmem:[#allocation6 + $0x68] sm:$0xff]  ;;  %v1451_v31 = vld [vmem:[#allocation6 + $0xd0] sm:$0xff] }
  0x19   :  { %130 = vmatpush.msra.mxu0 %v1382_v10  ;;  %150 = vmatpush.msra.mxu1 %v1384_v11  ;;  %v1453_v32 = vld [vmem:[#allocation6 + $0x48] sm:$0xff]  ;;  %v1455_v33 = vld [vmem:[#allocation6 + $0x50] sm:$0xff]  ;;  %v1461_v34 = vld [vmem:[#allocation6 + $0xb8] sm:$0xff] }
  0x1a   :  { %243 = vmatpush.msra.mxu3 %v1382_v10  ;;  %168 = vmatpush.msra.mxu2 %v1411_v19  ;;  %v1463_v35 = vld [vmem:[#allocation6 + $0x30] sm:$0xff]  ;;  %v1465_v36 = vld [vmem:[#allocation6 + $0x38] sm:$0xff]  ;;  %v1471_v37 = vld [vmem:[#allocation6 + $0xa0] sm:$0xff] }
  0x1b   :  { %131 = vmatpush.msra.mxu0 %v1393_v14  ;;  %151 = vmatpush.msra.mxu1 %v1395_v15  ;;  %1914 = vst [vmem:[#allocation13_spill] sm:$0xff] %v1463_v35  ;;  %v1473_v38 = vld [vmem:[#allocation6 + $0x18] sm:$0xff]  ;;  %v1475_v39 = vld [vmem:[#allocation6 + $0x20] sm:$0xff]  ;;  %v1481_v40 = vld [vmem:[#allocation6 + $0x88] sm:$0xff] }
  0x1c   :  { %244 = vmatpush.msra.mxu3 %v1393_v14  ;;  %169 = vmatpush.msra.mxu2 %v1421_v22  ;;  %1915 = vst [vmem:[#allocation14_spill] sm:$0xff] %v1465_v36  ;;  %v1483_v41 = vld [vmem:[#allocation6] sm:$0xff]  ;;  %v1485_v42 = vld [vmem:[#allocation6 + $0x8] sm:$0xff]  ;;  %v1494_v44 = vld [vmem:[#allocation6 + $0x70] sm:$0xff] }
  0x1d   :  { %132 = vmatpush.msra.mxu0 %v1403_v17  ;;  %152 = vmatpush.msra.mxu1 %v1405_v18  ;;  %1916 = vst [vmem:[#allocation15_spill] sm:$0xff] %v1473_v38  ;;  %v1491_v43 = vld [vmem:[#allocation8] sm:$0xff]  ;;  %v1501_v45 = vld [vmem:[#allocation6 + $0x58] sm:$0xff]  ;;  %v1511_v47 = vld [vmem:[#allocation6 + $0x28] sm:$0xff] }
  0x1e   :  { %245 = vmatpush.msra.mxu3 %v1403_v17  ;;  %170 = vmatpush.msra.mxu2 %v1431_v25  ;;  %1917 = vst [vmem:[#allocation16_spill] sm:$0xff] %v1475_v39  ;;  %v1505_v46 = vld [vmem:[#allocation6 + $0x40] sm:$0xff]  ;;  %v1517_v48 = vld [vmem:[#allocation6 + $0x10] sm:$0xff]  ;;  %v123_v50 = vld [vmem:[#allocation3 + $0x8] sm:$0xff] }
  0x1f   :  { %133 = vmatpush.msra.mxu0 %v1413_v20  ;;  %153 = vmatpush.msra.mxu1 %v1415_v21  ;;  %1918 = vst [vmem:[#allocation17_spill] sm:$0xff] %v1483_v41  ;;  %v122_v49 = vld [vmem:[#allocation3] sm:$0xff] }
  0x20   :  { %246 = vmatpush.msra.mxu3 %v1413_v20  ;;  %171 = vmatpush.msra.mxu2 %v1441_v28  ;;  %1919 = vst [vmem:[#allocation18_spill] sm:$0xff] %v1485_v42 }
  0x21   :  { %134 = vmatpush.msra.mxu0 %v1423_v23  ;;  %154 = vmatpush.msra.mxu1 %v1425_v24  ;;  %1920 = vst [vmem:[#allocation19_spill] sm:$0xff] %v1511_v47 }
  0x22   :  { %247 = vmatpush.msra.mxu3 %v1423_v23  ;;  %172 = vmatpush.msra.mxu2 %v1451_v31  ;;  %1921 = vst [vmem:[#allocation20_spill] sm:$0xff] %v1517_v48 }
  0x23   :  { %135 = vmatpush.msra.mxu0 %v1433_v26  ;;  %155 = vmatpush.msra.mxu1 %v1435_v27 }
  0x24   :  { %248 = vmatpush.msra.mxu3 %v1433_v26  ;;  %173 = vmatpush.msra.mxu2 %v1461_v34 }
  0x25   :  { %136 = vmatpush.msra.mxu0 %v1443_v29  ;;  %156 = vmatpush.msra.mxu1 %v1445_v30 }
  0x26   :  { %249 = vmatpush.msra.mxu3 %v1443_v29  ;;  %174 = vmatpush.msra.mxu2 %v1471_v37 }
  0x27   :  { %137 = vmatpush.msra.mxu0 %v1453_v32  ;;  %157 = vmatpush.msra.mxu1 %v1455_v33 }
  0x28   :  { %250 = vmatpush.msra.mxu3 %v1453_v32  ;;  %175 = vmatpush.msra.mxu2 %v1481_v40 }
  0x29   :  { %138 = vmatpush.msra.mxu0 %v1463_v35  ;;  %158 = vmatpush.msra.mxu1 %v1465_v36 }
  0x2a   :  { %251 = vmatpush.msra.mxu3 %v1463_v35  ;;  %176 = vmatpush.msra.mxu2 %v1494_v44 }
  0x2b   :  { %139 = vmatpush.msra.mxu0 %v1473_v38  ;;  %159 = vmatpush.msra.mxu1 %v1475_v39 }
  0x2c   :  { %252 = vmatpush.msra.mxu3 %v1473_v38  ;;  %177 = vmatpush.msra.mxu2 %v1501_v45 }
  0x2d   :  { %140 = vmatpush.msra.mxu0 %v1483_v41  ;;  %160 = vmatpush.msra.mxu1 %v1485_v42 }
  0x2e   :  { %141 = vmatmul.f32.vlgmr.msra.gmra.mxu0 %v1491_v43  ;;  %161 = vmatmul.f32.vlgmr.msra.gmra.mxu1 %v1491_v43 }
  0x2f   :  { %258 = vmatpush.msrb.mxu0 %v1353_v1  ;;  %278 = vmatpush.msrb.mxu1 %v1386_v12 }
  0x30   :  { %253 = vmatpush.msra.mxu3 %v1483_v41  ;;  %178 = vmatpush.msra.mxu2 %v1505_v46 }
  0x31   :  { %259 = vmatpush.msrb.mxu0 %v1359_v3  ;;  %279 = vmatpush.msrb.mxu1 %v1391_v13 }
  0x32   :  { %372 = vmatpush.msrb.mxu3 %v1353_v1  ;;  %179 = vmatpush.msra.mxu2 %v1511_v47 }
  0x33   :  { %260 = vmatpush.msrb.mxu0 %v1363_v5  ;;  %280 = vmatpush.msrb.mxu1 %v1401_v16 }
  0x34   :  { %373 = vmatpush.msrb.mxu3 %v1359_v3  ;;  %180 = vmatpush.msra.mxu2 %v1517_v48 }
  0x35   :  { %261 = vmatpush.msrb.mxu0 %v1370_v7  ;;  %281 = vmatpush.msrb.mxu1 %v1411_v19 }
  0x36   :  { %374 = vmatpush.msrb.mxu3 %v1363_v5  ;;  %181 = vmatmul.f32.vlgmr.msra.gmra.mxu2 %v1491_v43 }
  0x37   :  { %262 = vmatpush.msrb.mxu0 %v1377_v9  ;;  %282 = vmatpush.msrb.mxu1 %v1421_v22 }
  0x38   :  { %352 = vmatpush.msrb.mxu2 %v1351_v0  ;;  %375 = vmatpush.msrb.mxu3 %v1370_v7 }
  0x39   :  { %263 = vmatpush.msrb.mxu0 %v1384_v11  ;;  %283 = vmatpush.msrb.mxu1 %v1431_v25 }
  0x3a   :  { %353 = vmatpush.msrb.mxu2 %v1355_v2  ;;  %376 = vmatpush.msrb.mxu3 %v1377_v9 }
  0x3b   :  { %264 = vmatpush.msrb.mxu0 %v1395_v15  ;;  %284 = vmatpush.msrb.mxu1 %v1441_v28 }
  0x3c   :  { %354 = vmatpush.msrb.mxu2 %v1361_v4  ;;  %377 = vmatpush.msrb.mxu3 %v1384_v11 }
  0x3d   :  { %265 = vmatpush.msrb.mxu0 %v1405_v18  ;;  %285 = vmatpush.msrb.mxu1 %v1451_v31 }
  0x3e   :  { %355 = vmatpush.msrb.mxu2 %v1368_v6  ;;  %378 = vmatpush.msrb.mxu3 %v1395_v15 }
  0x3f   :  { %266 = vmatpush.msrb.mxu0 %v1415_v21  ;;  %286 = vmatpush.msrb.mxu1 %v1461_v34 }
  0x40   :  { %356 = vmatpush.msrb.mxu2 %v1375_v8  ;;  %379 = vmatpush.msrb.mxu3 %v1405_v18 }
  0x41   :  { %267 = vmatpush.msrb.mxu0 %v1425_v24  ;;  %287 = vmatpush.msrb.mxu1 %v1471_v37 }
  0x42   :  { %357 = vmatpush.msrb.mxu2 %v1382_v10  ;;  %380 = vmatpush.msrb.mxu3 %v1415_v21 }
  0x43   :  { %268 = vmatpush.msrb.mxu0 %v1435_v27  ;;  %288 = vmatpush.msrb.mxu1 %v1481_v40 }
  0x44   :  { %358 = vmatpush.msrb.mxu2 %v1393_v14  ;;  %381 = vmatpush.msrb.mxu3 %v1425_v24 }
  0x45   :  { %269 = vmatpush.msrb.mxu0 %v1445_v30  ;;  %289 = vmatpush.msrb.mxu1 %v1494_v44 }
  0x46   :  { %359 = vmatpush.msrb.mxu2 %v1403_v17  ;;  %382 = vmatpush.msrb.mxu3 %v1435_v27 }
  0x47   :  { %270 = vmatpush.msrb.mxu0 %v1455_v33  ;;  %290 = vmatpush.msrb.mxu1 %v1501_v45 }
  0x48   :  { %360 = vmatpush.msrb.mxu2 %v1413_v20  ;;  %383 = vmatpush.msrb.mxu3 %v1445_v30 }
  0x49   :  { %271 = vmatpush.msrb.mxu0 %v1465_v36  ;;  %291 = vmatpush.msrb.mxu1 %v1505_v46 }
  0x4a   :  { %361 = vmatpush.msrb.mxu2 %v1423_v23  ;;  %384 = vmatpush.msrb.mxu3 %v1455_v33 }
  0x4b   :  { %272 = vmatpush.msrb.mxu0 %v1475_v39  ;;  %292 = vmatpush.msrb.mxu1 %v1511_v47 }
  0x4c   :  { %362 = vmatpush.msrb.mxu2 %v1433_v26  ;;  %385 = vmatpush.msrb.mxu3 %v1465_v36 }
  0x4d   :  { %273 = vmatpush.msrb.mxu0 %v1485_v42  ;;  %293 = vmatpush.msrb.mxu1 %v1517_v48 }
  0x4e   :  { %363 = vmatpush.msrb.mxu2 %v1443_v29  ;;  %386 = vmatpush.msrb.mxu3 %v1475_v39 }
  0x4f   :  { %392 = vmatpush.msra.mxu0 %v1386_v12  ;;  %466 = vmatpush.msra.mxu1 %v1351_v0 }
  0x50   :  { %364 = vmatpush.msrb.mxu2 %v1453_v32  ;;  %387 = vmatpush.msrb.mxu3 %v1485_v42 }
  0x51   :  { %393 = vmatpush.msra.mxu0 %v1391_v13  ;;  %467 = vmatpush.msra.mxu1 %v1355_v2 }
  0x52   :  { %365 = vmatpush.msrb.mxu2 %v1463_v35 }
  0x53   :  { %394 = vmatpush.msra.mxu0 %v1401_v16  ;;  %468 = vmatpush.msra.mxu1 %v1361_v4 }
  0x54   :  { %366 = vmatpush.msrb.mxu2 %v1473_v38 }
  0x55   :  { %395 = vmatpush.msra.mxu0 %v1411_v19  ;;  %469 = vmatpush.msra.mxu1 %v1368_v6 }
  0x56   :  { %367 = vmatpush.msrb.mxu2 %v1483_v41 }
  0x57   :  { %396 = vmatpush.msra.mxu0 %v1421_v22  ;;  %470 = vmatpush.msra.mxu1 %v1375_v8 }
  0x58   :  { %486 = vmatpush.msra.mxu2 %v1353_v1 }
  0x59   :  { %397 = vmatpush.msra.mxu0 %v1431_v25  ;;  %471 = vmatpush.msra.mxu1 %v1382_v10 }
  0x5a   :  { %487 = vmatpush.msra.mxu2 %v1359_v3 }
  0x5b   :  { %398 = vmatpush.msra.mxu0 %v1441_v28  ;;  %472 = vmatpush.msra.mxu1 %v1393_v14 }
  0x5c   :  { %488 = vmatpush.msra.mxu2 %v1363_v5 }
  0x5d   :  { %399 = vmatpush.msra.mxu0 %v1451_v31  ;;  %473 = vmatpush.msra.mxu1 %v1403_v17 }
  0x5e   :  { %489 = vmatpush.msra.mxu2 %v1370_v7 }
  0x5f   :  { %400 = vmatpush.msra.mxu0 %v1461_v34  ;;  %474 = vmatpush.msra.mxu1 %v1413_v20 }
  0x60   :  { %490 = vmatpush.msra.mxu2 %v1377_v9 }
  0x61   :  { %401 = vmatpush.msra.mxu0 %v1471_v37  ;;  %475 = vmatpush.msra.mxu1 %v1423_v23 }
  0x62   :  { %491 = vmatpush.msra.mxu2 %v1384_v11 }
  0x63   :  { %402 = vmatpush.msra.mxu0 %v1481_v40  ;;  %476 = vmatpush.msra.mxu1 %v1433_v26 }
  0x64   :  { %492 = vmatpush.msra.mxu2 %v1395_v15 }
  0x65   :  { %403 = vmatpush.msra.mxu0 %v1494_v44  ;;  %477 = vmatpush.msra.mxu1 %v1443_v29 }
  0x66   :  { %493 = vmatpush.msra.mxu2 %v1405_v18 }
  0x67   :  { %404 = vmatpush.msra.mxu0 %v1501_v45  ;;  %478 = vmatpush.msra.mxu1 %v1453_v32 }
  0x68   :  { %494 = vmatpush.msra.mxu2 %v1415_v21 }
  0x69   :  { %405 = vmatpush.msra.mxu0 %v1505_v46  ;;  %479 = vmatpush.msra.mxu1 %v1463_v35 }
  0x6a   :  { %495 = vmatpush.msra.mxu2 %v1425_v24 }
  0x6b   :  { %406 = vmatpush.msra.mxu0 %v1511_v47  ;;  %480 = vmatpush.msra.mxu1 %v1473_v38  ;;  %v124_v38 = vld [vmem:[#allocation3 + $0x10] sm:$0xff] }
  0x6c   :  { %496 = vmatpush.msra.mxu2 %v1435_v27 }
  0x6d   :  { %407 = vmatpush.msra.mxu0 %v1517_v48  ;;  %481 = vmatpush.msra.mxu1 %v1483_v41  ;;  %v1631_v41 = vld [vmem:[%s1895_s2] ss:$0 sm:$0xff] }
  0x6e   :  { %497 = vmatpush.msra.mxu2 %v1445_v30 }
  0x70   :  { %498 = vmatpush.msra.mxu2 %v1455_v33 }
  0x72   :  { %499 = vmatpush.msra.mxu2 %v1465_v36 }
  0x74   :  { %500 = vmatpush.msra.mxu2 %v1475_v39 }
  0x76   :  { %501 = vmatpush.msra.mxu2 %v1485_v42 }
  0xab   :  { %v142_v51 = vpop.f32.mrf.mxu0  ;;  %v162_v52 = vpop.f32.mrf.mxu1 }
  0xac   :  { %v185_v53 = vadd.f32 %v142_v51, %v122_v49  ;;  %v205_v54 = vadd.f32 %v162_v52, %v123_v50 }
  0xae   :  { %v1053_v55 = vmul.f32 -1.442695, %v185_v53  ;;  %v1054_v56 = vmul.f32 -1.442695, %v205_v54 }
  0xb0   :  { %1078 = vpow2.f32 %v1053_v55 }
  0xb1   :  { %1080 = vpow2.f32 %v1054_v56 }
  0xb6   :  { %v1079_v57 = vpop.eup %1078 }
  0xb7   :  { %v1081_v58 = vpop.eup %1080  ;;  %v189_v59 = vadd.f32 1.0, %v1079_v57 }
  0xb8   :  { %v209_v60 = vadd.f32 1.0, %v1081_v58 }
  0xb9   :  { %1082 = vrcp.f32 %v189_v59  ;;  %v182_v51 = vpop.f32.mrf.mxu2  ;;  %v201_v52 = vand.u32 2147483648, %v189_v59  ;;  %v199_v54 = vand.u32 2147483647, %v189_v59  ;;  %vm195_vm1 = vweird.f32 %v189_v59 }
  0xba   :  { %1084 = vrcp.f32 %v209_v60  ;;  %v225_v57 = vadd.f32 %v1631_v41, %v182_v51  ;;  %vm215_vm4 = vweird.f32 %v209_v60  ;;  %v219_v36 = vand.u32 2147483647, %v209_v60 }
  0xbb   :  { %v202_v58 = vor.u32 1.1754944e-38, %v201_v52  ;;  %vm200_vm3 = vcmp.eq.f32.partialorder %v199_v54, 8.507059e+37 }
  0xbc   :  { %vm220_vm7 = vcmp.eq.f32.partialorder %v219_v36, 8.507059e+37  ;;  %v1923_v36 = vld [vmem:[#allocation14_spill] sm:$0xff] }
  0xbf   :  { %v1083_v61 = vpop.eup %1082 }
  0xc0   :  { %v1085_v62 = vpop.eup %1084  ;;  %v191_v63 = vmul.f32 %v1083_v61, %v189_v59  ;;  %vm196_vm0 = vweird.f32 %v1083_v61 }
  0xc1   :  { %v211_v42 = vmul.f32 %v1085_v62, %v209_v60  ;;  %vm197_vm2 = vmor %vm195_vm1, %vm196_vm0  ;;  %vm216_vm5 = vweird.f32 %v1085_v62 }
  0xc2   :  { %v192_v49 = vsub.f32 1.0, %v191_v63  ;;  %vm217_vm6 = vmor %vm215_vm4, %vm216_vm5 }
  0xc3   :  { %v212_v50 = vsub.f32 1.0, %v211_v42  ;;  %v221_v42 = vand.u32 2147483648, %v209_v60  ;;  %v1929_v60 = vld [vmem:[#allocation18_spill] sm:$0xff] }
  0xc4   :  { %v193_v53 = vmul.f32 %v1083_v61, %v192_v49 }
  0xc5   :  { %v213_v55 = vmul.f32 %v1085_v62, %v212_v50  ;;  %v222_v50 = vor.u32 1.1754944e-38, %v221_v42 }
  0xc6   :  { %v194_v56 = vadd.f32 %v1083_v61, %v193_v53 }
  0xc7   :  { %v214_v39 = vadd.f32 %v1085_v62, %v213_v55 }
  0xc8   :  { %v198_v48 = vsel %vm197_vm2, %v1083_v61, %v194_v56 }
  0xc9   :  { %v203_v63 = vsel %vm200_vm3, %v202_v58, %v198_v48  ;;  %v218_v35 = vsel %vm217_vm6, %v1085_v62, %v214_v39  ;;  %v1925_v39 = vld [vmem:[#allocation15_spill] sm:$0xff]  ;;  %v1928_v48 = vld [vmem:[#allocation17_spill] sm:$0xff]  ;;  %v236_v62 = vld [vmem:[#allocation3 + $0x20] sm:$0xff] }
  0xca   :  { %v226_v47 = vmul.f32 %v225_v57, %v203_v63  ;;  %v223_v59 = vsel %vm220_vm7, %v222_v50, %v218_v35  ;;  %v1922_v35 = vld [vmem:[#allocation13_spill] sm:$0xff]  ;;  %v235_v58 = vld [vmem:[#allocation3 + $0x18] sm:$0xff] }
  0xcb   :  { %v229_v51 = vsub.f32 1.0, %v223_v59  ;;  %v231_v61 = vmul.f32 %v223_v59, %v1491_v43  ;;  %v1926_v43 = vld [vmem:[#allocation16_spill] sm:$0xff] }
  0xcc   :  { %v227_v49 = vadd.f32 %v226_v47, %v124_v38  ;;  %v1924_v38 = vld [vmem:[#allocation19_spill] sm:$0xff]  ;;  %v1927_v47 = vld [vmem:[#allocation20_spill] sm:$0xff] }
  0xce   :  { %1086 = vtanh.f32 %v227_v49 }
  0xd4   :  { %v1087_v53 = vpop.eup %1086 }
  0xd5   :  { %v230_v52 = vmul.f32 %v1087_v53, %v229_v51 }
  0xd7   :  { %v1635_v54 = vadd.f32 %v231_v61, %v230_v52 }
  0xd9   :  { %233 = vst [vmem:[#allocation9] sm:$0xff] %v1635_v54  ;;  %254 = vmatmul.f32.vlgmr.msra.gmra.mxu3 %v1635_v54  ;;  %274 = vmatmul.f32.vlgmr.msrb.gmra.mxu0 %v1635_v54 }
  0xda   :  { %294 = vmatmul.f32.vlgmr.msrb.gmra.mxu1 %v1635_v54  ;;  %506 = vmatpush.msra.mxu3 %v1386_v12 }
  0xdb   :  { %580 = vmatpush.msrb.mxu0 %v1351_v0  ;;  %600 = vmatpush.msrb.mxu1 %v1353_v1 }
  0xdc   :  { %507 = vmatpush.msra.mxu3 %v1391_v13 }
  0xdd   :  { %581 = vmatpush.msrb.mxu0 %v1355_v2  ;;  %601 = vmatpush.msrb.mxu1 %v1359_v3 }
  0xde   :  { %508 = vmatpush.msra.mxu3 %v1401_v16 }
  0xdf   :  { %582 = vmatpush.msrb.mxu0 %v1361_v4  ;;  %602 = vmatpush.msrb.mxu1 %v1363_v5 }
  0xe0   :  { %509 = vmatpush.msra.mxu3 %v1411_v19 }
  0xe1   :  { %583 = vmatpush.msrb.mxu0 %v1368_v6  ;;  %603 = vmatpush.msrb.mxu1 %v1370_v7 }
  0xe2   :  { %510 = vmatpush.msra.mxu3 %v1421_v22 }
  0xe3   :  { %584 = vmatpush.msrb.mxu0 %v1375_v8  ;;  %604 = vmatpush.msrb.mxu1 %v1377_v9 }
  0xe4   :  { %511 = vmatpush.msra.mxu3 %v1431_v25 }
  0xe5   :  { %585 = vmatpush.msrb.mxu0 %v1382_v10  ;;  %605 = vmatpush.msrb.mxu1 %v1384_v11 }
  0xe6   :  { %512 = vmatpush.msra.mxu3 %v1441_v28 }
  0xe7   :  { %586 = vmatpush.msrb.mxu0 %v1393_v14  ;;  %606 = vmatpush.msrb.mxu1 %v1395_v15 }
  0xe8   :  { %513 = vmatpush.msra.mxu3 %v1451_v31 }
  0xe9   :  { %587 = vmatpush.msrb.mxu0 %v1403_v17  ;;  %607 = vmatpush.msrb.mxu1 %v1405_v18 }
  0xea   :  { %514 = vmatpush.msra.mxu3 %v1461_v34 }
  0xeb   :  { %588 = vmatpush.msrb.mxu0 %v1413_v20  ;;  %608 = vmatpush.msrb.mxu1 %v1415_v21 }
  0xec   :  { %515 = vmatpush.msra.mxu3 %v1471_v37 }
  0xed   :  { %589 = vmatpush.msrb.mxu0 %v1423_v23  ;;  %609 = vmatpush.msrb.mxu1 %v1425_v24 }
  0xee   :  { %516 = vmatpush.msra.mxu3 %v1481_v40 }
  0xef   :  { %590 = vmatpush.msrb.mxu0 %v1433_v26  ;;  %610 = vmatpush.msrb.mxu1 %v1435_v27 }
  0xf0   :  { %517 = vmatpush.msra.mxu3 %v1494_v44 }
  0xf1   :  { %591 = vmatpush.msrb.mxu0 %v1443_v29  ;;  %611 = vmatpush.msrb.mxu1 %v1445_v30 }
  0xf2   :  { %518 = vmatpush.msra.mxu3 %v1501_v45 }
  0xf3   :  { %592 = vmatpush.msrb.mxu0 %v1453_v32  ;;  %612 = vmatpush.msrb.mxu1 %v1455_v33 }
  0xf4   :  { %519 = vmatpush.msra.mxu3 %v1505_v46 }
  0xf5   :  { %593 = vmatpush.msrb.mxu0 %v1922_v35  ;;  %613 = vmatpush.msrb.mxu1 %v1923_v36 }
  0xf6   :  { %520 = vmatpush.msra.mxu3 %v1924_v38  ;;  %v237_v38 = vld [vmem:[#allocation3 + $0x28] sm:$0xff] }
  0xf7   :  { %594 = vmatpush.msrb.mxu0 %v1925_v39  ;;  %614 = vmatpush.msrb.mxu1 %v1926_v43 }
  0xf8   :  { %521 = vmatpush.msra.mxu3 %v1927_v47 }
  0xf9   :  { %595 = vmatpush.msrb.mxu0 %v1928_v48  ;;  %615 = vmatpush.msrb.mxu1 %v1929_v60 }
 0x156   :  { %v275_v55 = vpop.f32.mrf.mxu0 }
 0x157   :  { %v318_v56 = vadd.f32 %v275_v55, %v236_v62 }
 0x159   :  { %v1056_v57 = vmul.f32 -1.442695, %v318_v56 }
 0x15b   :  { %1088 = vpow2.f32 %v1056_v57 }
 0x15c   :  { %v255_v63 = vpop.f32.mrf.mxu3 }
 0x15d   :  { %v298_v42 = vadd.f32 %v255_v63, %v235_v58  ;;  %v295_v58 = vpop.f32.mrf.mxu1 }
 0x15f   :  { %v1055_v49 = vmul.f32 -1.442695, %v298_v42 }
 0x161   :  { %v1089_v50 = vpop.eup %1088  ;;  %1090 = vpow2.f32 %v1055_v49  ;;  %v338_v49 = vadd.f32 %v1631_v41, %v295_v58 }
 0x162   :  { %v322_v59 = vadd.f32 1.0, %v1089_v50 }
 0x164   :  { %1092 = vrcp.f32 %v322_v59  ;;  %vm328_vm13 = vweird.f32 %v322_v59 }
 0x167   :  { %v1091_v51 = vpop.eup %1090 }
 0x168   :  { %v302_v53 = vadd.f32 1.0, %v1091_v51 }
 0x16a   :  { %1094 = vrcp.f32 %v302_v53  ;;  %v1093_v52 = vpop.eup %1092  ;;  %v314_v62 = vand.u32 2147483648, %v302_v53  ;;  %v312_v56 = vand.u32 2147483647, %v302_v53  ;;  %vm308_vm9 = vweird.f32 %v302_v53 }
 0x16b   :  { %v324_v61 = vmul.f32 %v1093_v52, %v322_v59  ;;  %vm329_vm12 = vweird.f32 %v1093_v52 }
 0x16c   :  { %v315_v42 = vor.u32 1.1754944e-38, %v314_v62  ;;  %vm313_vm11 = vcmp.eq.f32.partialorder %v312_v56, 8.507059e+37  ;;  %vm330_vm14 = vmor %vm328_vm13, %vm329_vm12 }
 0x16d   :  { %v325_v47 = vsub.f32 1.0, %v324_v61  ;;  %v334_v61 = vand.u32 2147483648, %v322_v59 }
 0x16f   :  { %v326_v57 = vmul.f32 %v1093_v52, %v325_v47  ;;  %v335_v35 = vor.u32 1.1754944e-38, %v334_v61 }
 0x170   :  { %v1095_v48 = vpop.eup %1094 }
 0x171   :  { %v304_v60 = vmul.f32 %v1095_v48, %v302_v53  ;;  %vm309_vm8 = vweird.f32 %v1095_v48  ;;  %v327_v51 = vadd.f32 %v1093_v52, %v326_v57  ;;  %v1937_v57 = vld [vmem:[#allocation18_spill] sm:$0xff] }
 0x172   :  { %vm310_vm10 = vmor %vm308_vm9, %vm309_vm8 }
 0x173   :  { %v305_v43 = vsub.f32 1.0, %v304_v60  ;;  %v331_v47 = vsel %vm330_vm14, %v1093_v52, %v327_v51  ;;  %v1936_v52 = vld [vmem:[#allocation17_spill] sm:$0xff] }
 0x175   :  { %v306_v55 = vmul.f32 %v1095_v48, %v305_v43  ;;  %v332_v43 = vand.u32 2147483647, %v322_v59  ;;  %v1935_v59 = vld [vmem:[#allocation20_spill] sm:$0xff] }
 0x177   :  { %v307_v63 = vadd.f32 %v1095_v48, %v306_v55  ;;  %vm333_vm15 = vcmp.eq.f32.partialorder %v332_v43, 8.507059e+37 }
 0x178   :  { %v336_v53 = vsel %vm333_vm15, %v335_v35, %v331_v47  ;;  %v1931_v35 = vld [vmem:[#allocation14_spill] sm:$0xff] }
 0x179   :  { %v311_v50 = vsel %vm310_vm10, %v1095_v48, %v307_v63  ;;  %v342_v62 = vsub.f32 1.0, %v336_v53  ;;  %v344_v48 = vmul.f32 %v336_v53, %v1635_v54  ;;  %v1930_v54 = vld [vmem:[#allocation13_spill] sm:$0xff]  ;;  %v349_v63 = vld [vmem:[#allocation3 + $0x30] sm:$0xff] }
 0x17a   :  { %v316_v39 = vsel %vm313_vm11, %v315_v42, %v311_v50  ;;  %v350_v42 = vld [vmem:[#allocation3 + $0x38] sm:$0xff] }
 0x17b   :  { %v339_v60 = vmul.f32 %v338_v49, %v316_v39  ;;  %v1934_v39 = vld [vmem:[#allocation16_spill] sm:$0xff] }
 0x17d   :  { %v340_v36 = vadd.f32 %v339_v60, %v237_v38  ;;  %v1933_v38 = vld [vmem:[#allocation15_spill] sm:$0xff] }
 0x17f   :  { %1096 = vtanh.f32 %v340_v36  ;;  %v1932_v36 = vld [vmem:[#allocation19_spill] sm:$0xff] }
 0x185   :  { %v1097_v55 = vpop.eup %1096 }
 0x186   :  { %v343_v58 = vmul.f32 %v1097_v55, %v342_v62 }
 0x188   :  { %v1691_v56 = vadd.f32 %v344_v48, %v343_v58 }
 0x18a   :  { %347 = vst [vmem:[#allocation9 + $0x8] sm:$0xff] %v1691_v56  ;;  %368 = vmatmul.f32.vlgmr.msrb.gmra.mxu2 %v1691_v56  ;;  %388 = vmatmul.f32.vlgmr.msrb.gmra.mxu3 %v1691_v56 }
 0x18b   :  { %408 = vmatmul.f32.vlgmr.msra.gmra.mxu0 %v1691_v56  ;;  %620 = vmatpush.msrb.mxu2 %v1386_v12 }
 0x18c   :  { %694 = vmatpush.msrb.mxu3 %v1351_v0  ;;  %714 = vmatpush.msra.mxu0 %v1353_v1 }
 0x18d   :  { %621 = vmatpush.msrb.mxu2 %v1391_v13 }
 0x18e   :  { %695 = vmatpush.msrb.mxu3 %v1355_v2  ;;  %715 = vmatpush.msra.mxu0 %v1359_v3 }
 0x18f   :  { %622 = vmatpush.msrb.mxu2 %v1401_v16 }
 0x190   :  { %696 = vmatpush.msrb.mxu3 %v1361_v4  ;;  %716 = vmatpush.msra.mxu0 %v1363_v5 }
 0x191   :  { %623 = vmatpush.msrb.mxu2 %v1411_v19 }
 0x192   :  { %697 = vmatpush.msrb.mxu3 %v1368_v6  ;;  %717 = vmatpush.msra.mxu0 %v1370_v7 }
 0x193   :  { %624 = vmatpush.msrb.mxu2 %v1421_v22 }
 0x194   :  { %698 = vmatpush.msrb.mxu3 %v1375_v8  ;;  %718 = vmatpush.msra.mxu0 %v1377_v9 }
 0x195   :  { %625 = vmatpush.msrb.mxu2 %v1431_v25 }
 0x196   :  { %699 = vmatpush.msrb.mxu3 %v1382_v10  ;;  %719 = vmatpush.msra.mxu0 %v1384_v11 }
 0x197   :  { %626 = vmatpush.msrb.mxu2 %v1441_v28 }
 0x198   :  { %700 = vmatpush.msrb.mxu3 %v1393_v14  ;;  %720 = vmatpush.msra.mxu0 %v1395_v15 }
 0x199   :  { %627 = vmatpush.msrb.mxu2 %v1451_v31 }
 0x19a   :  { %701 = vmatpush.msrb.mxu3 %v1403_v17  ;;  %721 = vmatpush.msra.mxu0 %v1405_v18 }
 0x19b   :  { %628 = vmatpush.msrb.mxu2 %v1461_v34 }
 0x19c   :  { %702 = vmatpush.msrb.mxu3 %v1413_v20  ;;  %722 = vmatpush.msra.mxu0 %v1415_v21 }
 0x19d   :  { %629 = vmatpush.msrb.mxu2 %v1471_v37 }
 0x19e   :  { %703 = vmatpush.msrb.mxu3 %v1423_v23  ;;  %723 = vmatpush.msra.mxu0 %v1425_v24 }
 0x19f   :  { %630 = vmatpush.msrb.mxu2 %v1481_v40 }
 0x1a0   :  { %704 = vmatpush.msrb.mxu3 %v1433_v26  ;;  %724 = vmatpush.msra.mxu0 %v1435_v27 }
 0x1a1   :  { %631 = vmatpush.msrb.mxu2 %v1494_v44 }
 0x1a2   :  { %705 = vmatpush.msrb.mxu3 %v1443_v29  ;;  %725 = vmatpush.msra.mxu0 %v1445_v30 }
 0x1a3   :  { %632 = vmatpush.msrb.mxu2 %v1501_v45 }
 0x1a4   :  { %706 = vmatpush.msrb.mxu3 %v1453_v32  ;;  %726 = vmatpush.msra.mxu0 %v1455_v33 }
 0x1a5   :  { %633 = vmatpush.msrb.mxu2 %v1505_v46 }
 0x1a6   :  { %707 = vmatpush.msrb.mxu3 %v1930_v54  ;;  %727 = vmatpush.msra.mxu0 %v1931_v35 }
 0x1a7   :  { %634 = vmatpush.msrb.mxu2 %v1932_v36 }
 0x1a8   :  { %708 = vmatpush.msrb.mxu3 %v1933_v38  ;;  %728 = vmatpush.msra.mxu0 %v1934_v39 }
 0x1a9   :  { %635 = vmatpush.msrb.mxu2 %v1935_v59 }
 0x1aa   :  { %709 = vmatpush.msrb.mxu3 %v1936_v52  ;;  %729 = vmatpush.msra.mxu0 %v1937_v57 }
 0x20d   :  { %v369_v49 = vpop.f32.mrf.mxu2  ;;  %v389_v50 = vpop.f32.mrf.mxu3 }
 0x20e   :  { %v412_v51 = vadd.f32 %v369_v49, %v349_v63  ;;  %v432_v61 = vadd.f32 %v389_v50, %v350_v42  ;;  %v409_v42 = vpop.f32.mrf.mxu0 }
 0x210   :  { %v1057_v60 = vmul.f32 -1.442695, %v412_v51  ;;  %v1058_v43 = vmul.f32 -1.442695, %v432_v61  ;;  %v452_v61 = vadd.f32 %v1631_v41, %v409_v42 }
 0x212   :  { %1098 = vpow2.f32 %v1057_v60 }
 0x213   :  { %1100 = vpow2.f32 %v1058_v43 }
 0x218   :  { %v1099_v47 = vpop.eup %1098 }
 0x219   :  { %v1101_v53 = vpop.eup %1100  ;;  %v416_v62 = vadd.f32 1.0, %v1099_v47 }
 0x21a   :  { %v436_v55 = vadd.f32 1.0, %v1101_v53  ;;  %v351_v53 = vld [vmem:[#allocation3 + $0x40] sm:$0xff] }
 0x21b   :  { %1102 = vrcp.f32 %v416_v62  ;;  %v428_v39 = vand.u32 2147483648, %v416_v62  ;;  %v426_v63 = vand.u32 2147483647, %v416_v62  ;;  %vm422_vm1 = vweird.f32 %v416_v62 }
 0x21c   :  { %1104 = vrcp.f32 %v436_v55  ;;  %v448_v35 = vand.u32 2147483648, %v436_v55  ;;  %vm442_vm5 = vweird.f32 %v436_v55 }
 0x21d   :  { %v429_v51 = vor.u32 1.1754944e-38, %v428_v39  ;;  %vm427_vm3 = vcmp.eq.f32.partialorder %v426_v63, 8.507059e+37 }
 0x221   :  { %v1103_v58 = vpop.eup %1102 }
 0x222   :  { %v1105_v48 = vpop.eup %1104  ;;  %v418_v52 = vmul.f32 %v1103_v58, %v416_v62  ;;  %vm423_vm0 = vweird.f32 %v1103_v58 }
 0x223   :  { %v438_v57 = vmul.f32 %v1105_v48, %v436_v55  ;;  %vm424_vm2 = vmor %vm422_vm1, %vm423_vm0  ;;  %vm443_vm4 = vweird.f32 %v1105_v48 }
 0x224   :  { %v419_v59 = vsub.f32 1.0, %v418_v52  ;;  %vm444_vm6 = vmor %vm442_vm5, %vm443_vm4 }
 0x225   :  { %v439_v38 = vsub.f32 1.0, %v438_v57 }
 0x226   :  { %v420_v36 = vmul.f32 %v1103_v58, %v419_v59  ;;  %v446_v59 = vand.u32 2147483647, %v436_v55 }
 0x227   :  { %v440_v49 = vmul.f32 %v1105_v48, %v439_v38  ;;  %v449_v38 = vor.u32 1.1754944e-38, %v448_v35 }
 0x228   :  { %v421_v50 = vadd.f32 %v1103_v58, %v420_v36  ;;  %vm447_vm7 = vcmp.eq.f32.partialorder %v446_v59, 8.507059e+37  ;;  %v1162_v59 = vld [vmem:[#allocation6 + $0x150] sm:$0xff] }
 0x229   :  { %v441_v47 = vadd.f32 %v1105_v48, %v440_v49 }
 0x22a   :  { %v425_v60 = vsel %vm424_vm2, %v1103_v58, %v421_v50 }
 0x22b   :  { %v430_v43 = vsel %vm427_vm3, %v429_v51, %v425_v60  ;;  %v445_v54 = vsel %vm444_vm6, %v1105_v48, %v441_v47  ;;  %v1159_v47 = vld [vmem:[#allocation6 + $0x168] sm:$0xff] }
 0x22c   :  { %v453_v52 = vmul.f32 %v452_v61, %v430_v43  ;;  %v450_v36 = vsel %vm447_vm7, %v449_v38, %v445_v54  ;;  %v1809_v43 = vld [vmem:[#allocation6 + $0x178] sm:$0xff]  ;;  %v1815_v38 = vld [vmem:[#allocation6 + $0x148] sm:$0xff] }
 0x22d   :  { %v456_v39 = vsub.f32 1.0, %v450_v36  ;;  %v458_v58 = vmul.f32 %v450_v36, %v1691_v56  ;;  %v1165_v36 = vld [vmem:[#allocation6 + $0x138] sm:$0xff] }
 0x22e   :  { %v454_v57 = vadd.f32 %v453_v52, %v351_v53  ;;  %v1160_v53 = vld [vmem:[#allocation6 + $0x170] sm:$0xff]  ;;  %v1812_v52 = vld [vmem:[#allocation6 + $0x160] sm:$0xff] }
 0x230   :  { %1106 = vtanh.f32 %v454_v57  ;;  %v1163_v57 = vld [vmem:[#allocation6 + $0x158] sm:$0xff] }
 0x236   :  { %v1107_v62 = vpop.eup %1106 }
 0x237   :  { %v457_v42 = vmul.f32 %v1107_v62, %v456_v39  ;;  %v1166_v39 = vld [vmem:[#allocation6 + $0x140] sm:$0xff]  ;;  %v1818_v62 = vld [vmem:[#allocation6 + $0x130] sm:$0xff] }
 0x239   :  { %v1747_v63 = vadd.f32 %v458_v58, %v457_v42  ;;  %v1168_v42 = vld [vmem:[#allocation6 + $0x120] sm:$0xff]  ;;  %v1169_v58 = vld [vmem:[#allocation6 + $0x128] sm:$0xff] }
 0x23b   :  { %461 = vst [vmem:[#allocation9 + $0x10] sm:$0xff] %v1747_v63  ;;  %482 = vmatmul.f32.vlgmr.msra.gmra.mxu1 %v1747_v63  ;;  %502 = vmatmul.f32.vlgmr.msra.gmra.mxu2 %v1747_v63 }
 0x23c   :  { %522 = vmatmul.f32.vlgmr.msra.gmra.mxu3 %v1747_v63  ;;  %734 = vmatpush.msra.mxu1 %v1386_v12  ;;  %v464_v12 = vld [vmem:[#allocation3 + $0x50] sm:$0xff] }
 0x23d   :  { %808 = vmatpush.msra.mxu2 %v1351_v0  ;;  %828 = vmatpush.msra.mxu3 %v1353_v1  ;;  %v1938_v0 = vld [vmem:[#allocation13_spill] sm:$0xff]  ;;  %v1939_v1 = vld [vmem:[#allocation14_spill] sm:$0xff] }
 0x23e   :  { %735 = vmatpush.msra.mxu1 %v1391_v13 }
 0x23f   :  { %809 = vmatpush.msra.mxu2 %v1355_v2  ;;  %829 = vmatpush.msra.mxu3 %v1359_v3  ;;  %v1940_v2 = vld [vmem:[#allocation19_spill] sm:$0xff] }
 0x240   :  { %736 = vmatpush.msra.mxu1 %v1401_v16  ;;  %v1941_v3 = vld [vmem:[#allocation15_spill] sm:$0xff] }
 0x241   :  { %810 = vmatpush.msra.mxu2 %v1361_v4  ;;  %830 = vmatpush.msra.mxu3 %v1363_v5  ;;  %v1942_v4 = vld [vmem:[#allocation16_spill] sm:$0xff] }
 0x242   :  { %737 = vmatpush.msra.mxu1 %v1411_v19  ;;  %v1943_v5 = vld [vmem:[#allocation20_spill] sm:$0xff] }
 0x243   :  { %811 = vmatpush.msra.mxu2 %v1368_v6  ;;  %831 = vmatpush.msra.mxu3 %v1370_v7  ;;  %v1944_v6 = vld [vmem:[#allocation17_spill] sm:$0xff]  ;;  %v1945_v7 = vld [vmem:[#allocation18_spill] sm:$0xff] }
 0x244   :  { %738 = vmatpush.msra.mxu1 %v1421_v22 }
 0x245   :  { %812 = vmatpush.msra.mxu2 %v1375_v8  ;;  %832 = vmatpush.msra.mxu3 %v1377_v9  ;;  %v463_v8 = vld [vmem:[#allocation3 + $0x48] sm:$0xff] }
 0x246   :  { %739 = vmatpush.msra.mxu1 %v1431_v25 }
 0x247   :  { %813 = vmatpush.msra.mxu2 %v1382_v10  ;;  %833 = vmatpush.msra.mxu3 %v1384_v11 }
 0x248   :  { %740 = vmatpush.msra.mxu1 %v1441_v28 }
 0x249   :  { %814 = vmatpush.msra.mxu2 %v1393_v14  ;;  %834 = vmatpush.msra.mxu3 %v1395_v15 }
 0x24a   :  { %741 = vmatpush.msra.mxu1 %v1451_v31 }
 0x24b   :  { %815 = vmatpush.msra.mxu2 %v1403_v17  ;;  %835 = vmatpush.msra.mxu3 %v1405_v18 }
 0x24c   :  { %742 = vmatpush.msra.mxu1 %v1461_v34  ;;  %v465_v34 = vld [vmem:[#allocation3 + $0x58] sm:$0xff] }
 0x24d   :  { %816 = vmatpush.msra.mxu2 %v1413_v20  ;;  %836 = vmatpush.msra.mxu3 %v1415_v21 }
 0x24e   :  { %743 = vmatpush.msra.mxu1 %v1471_v37 }
 0x24f   :  { %817 = vmatpush.msra.mxu2 %v1423_v23  ;;  %837 = vmatpush.msra.mxu3 %v1425_v24 }
 0x250   :  { %744 = vmatpush.msra.mxu1 %v1481_v40 }
 0x251   :  { %818 = vmatpush.msra.mxu2 %v1433_v26  ;;  %838 = vmatpush.msra.mxu3 %v1435_v27 }
 0x252   :  { %745 = vmatpush.msra.mxu1 %v1494_v44 }
 0x253   :  { %819 = vmatpush.msra.mxu2 %v1443_v29  ;;  %839 = vmatpush.msra.mxu3 %v1445_v30 }
 0x254   :  { %746 = vmatpush.msra.mxu1 %v1501_v45 }
 0x255   :  { %820 = vmatpush.msra.mxu2 %v1453_v32  ;;  %840 = vmatpush.msra.mxu3 %v1455_v33 }
 0x256   :  { %747 = vmatpush.msra.mxu1 %v1505_v46 }
 0x257   :  { %821 = vmatpush.msra.mxu2 %v1938_v0  ;;  %841 = vmatpush.msra.mxu3 %v1939_v1  ;;  %v1171_v0 = vld [vmem:[#allocation6 + $0x108] sm:$0xff]  ;;  %v1172_v1 = vld [vmem:[#allocation6 + $0x110] sm:$0xff] }
 0x258   :  { %748 = vmatpush.msra.mxu1 %v1940_v2  ;;  %v1824_v2 = vld [vmem:[#allocation6 + $0x100] sm:$0xff] }
 0x259   :  { %822 = vmatpush.msra.mxu2 %v1941_v3  ;;  %842 = vmatpush.msra.mxu3 %v1942_v4  ;;  %v1174_v3 = vld [vmem:[#allocation6 + $0xf0] sm:$0xff]  ;;  %v1175_v4 = vld [vmem:[#allocation6 + $0xf8] sm:$0xff] }
 0x25a   :  { %749 = vmatpush.msra.mxu1 %v1943_v5  ;;  %v1827_v5 = vld [vmem:[#allocation6 + $0xe8] sm:$0xff] }
 0x25b   :  { %823 = vmatpush.msra.mxu2 %v1944_v6  ;;  %843 = vmatpush.msra.mxu3 %v1945_v7  ;;  %v1177_v6 = vld [vmem:[#allocation6 + $0xd8] sm:$0xff]  ;;  %v1178_v7 = vld [vmem:[#allocation6 + $0xe0] sm:$0xff] }
 0x2b8   :  { %v483_v9 = vpop.f32.mrf.mxu1 }
 0x2b9   :  { %v526_v10 = vadd.f32 %v483_v9, %v463_v8  ;;  %v1830_v8 = vld [vmem:[#allocation6 + $0xd0] sm:$0xff]  ;;  %v1180_v9 = vld [vmem:[#allocation6 + $0xc0] sm:$0xff] }
 0x2bb   :  { %v1059_v11 = vmul.f32 -1.442695, %v526_v10  ;;  %v1181_v10 = vld [vmem:[#allocation6 + $0xc8] sm:$0xff] }
 0x2bd   :  { %1108 = vpow2.f32 %v1059_v11  ;;  %v1833_v11 = vld [vmem:[#allocation6 + $0xb8] sm:$0xff] }
 0x2be   :  { %v503_v13 = vpop.f32.mrf.mxu2 }
 0x2bf   :  { %v546_v14 = vadd.f32 %v503_v13, %v464_v12  ;;  %v523_v27 = vpop.f32.mrf.mxu3  ;;  %v1183_v12 = vld [vmem:[#allocation6 + $0xa8] sm:$0xff]  ;;  %v1184_v13 = vld [vmem:[#allocation6 + $0xb0] sm:$0xff] }
 0x2c0   :  { %v566_v33 = vadd.f32 %v1631_v41, %v523_v27  ;;  %v1198_v27 = vld [vmem:[#allocation6 + $0x30] sm:$0xff] }
 0x2c1   :  { %v1060_v15 = vmul.f32 -1.442695, %v546_v14  ;;  %v1836_v14 = vld [vmem:[#allocation6 + $0xa0] sm:$0xff] }
 0x2c3   :  { %v1109_v16 = vpop.eup %1108  ;;  %1110 = vpow2.f32 %v1060_v15  ;;  %v1186_v15 = vld [vmem:[#allocation6 + $0x90] sm:$0xff] }
 0x2c4   :  { %v530_v17 = vadd.f32 1.0, %v1109_v16  ;;  %v1187_v16 = vld [vmem:[#allocation6 + $0x98] sm:$0xff] }
 0x2c6   :  { %1112 = vrcp.f32 %v530_v17  ;;  %v542_v23 = vand.u32 2147483648, %v530_v17  ;;  %v540_v25 = vand.u32 2147483647, %v530_v17  ;;  %vm536_vm9 = vweird.f32 %v530_v17 }
 0x2c8   :  { %v543_v30 = vor.u32 1.1754944e-38, %v542_v23  ;;  %vm541_vm11 = vcmp.eq.f32.partialorder %v540_v25, 8.507059e+37  ;;  %v1845_v23 = vld [vmem:[#allocation6 + $0x58] sm:$0xff]  ;;  %v1196_v25 = vld [vmem:[#allocation6 + $0x50] sm:$0xff] }
 0x2c9   :  { %v1111_v18 = vpop.eup %1110 }
 0x2ca   :  { %v550_v19 = vadd.f32 1.0, %v1111_v18  ;;  %v1189_v18 = vld [vmem:[#allocation6 + $0x78] sm:$0xff] }
 0x2cc   :  { %v1113_v20 = vpop.eup %1112  ;;  %1114 = vrcp.f32 %v550_v19  ;;  %v562_v44 = vand.u32 2147483648, %v550_v19  ;;  %v560_v46 = vand.u32 2147483647, %v550_v19  ;;  %vm556_vm13 = vweird.f32 %v550_v19 }
 0x2cd   :  { %v532_v21 = vmul.f32 %v1113_v20, %v530_v17  ;;  %vm537_vm8 = vweird.f32 %v1113_v20  ;;  %v1839_v17 = vld [vmem:[#allocation6 + $0x88] sm:$0xff] }
 0x2ce   :  { %vm538_vm10 = vmor %vm536_vm9, %vm537_vm8  ;;  %v563_v35 = vor.u32 1.1754944e-38, %v562_v44  ;;  %vm561_vm15 = vcmp.eq.f32.partialorder %v560_v46, 8.507059e+37 }
 0x2cf   :  { %v533_v22 = vsub.f32 1.0, %v532_v21  ;;  %v1192_v21 = vld [vmem:[#allocation6 + $0x60] sm:$0xff] }
 0x2d1   :  { %v534_v24 = vmul.f32 %v1113_v20, %v533_v22  ;;  %v1193_v22 = vld [vmem:[#allocation6 + $0x68] sm:$0xff] }
 0x2d2   :  { %v1115_v26 = vpop.eup %1114 }
 0x2d3   :  { %v552_v28 = vmul.f32 %v1115_v26, %v550_v19  ;;  %v535_v29 = vadd.f32 %v1113_v20, %v534_v24  ;;  %vm557_vm12 = vweird.f32 %v1115_v26  ;;  %v1190_v19 = vld [vmem:[#allocation6 + $0x80] sm:$0xff]  ;;  %v1195_v24 = vld [vmem:[#allocation6 + $0x48] sm:$0xff] }
 0x2d4   :  { %vm558_vm14 = vmor %vm556_vm13, %vm557_vm12 }
 0x2d5   :  { %v553_v31 = vsub.f32 1.0, %v552_v28  ;;  %v539_v32 = vsel %vm538_vm10, %v1113_v20, %v535_v29  ;;  %v1842_v20 = vld [vmem:[#allocation6 + $0x70] sm:$0xff]  ;;  %v1199_v28 = vld [vmem:[#allocation6 + $0x38] sm:$0xff]  ;;  %v1851_v29 = vld [vmem:[#allocation6 + $0x28] sm:$0xff] }
 0x2d6   :  { %v544_v37 = vsel %vm541_vm11, %v543_v30, %v539_v32  ;;  %v1201_v30 = vld [vmem:[#allocation6 + $0x18] sm:$0xff]  ;;  %v1854_v32 = vld [vmem:[#allocation6 + $0x10] sm:$0xff] }
 0x2d7   :  { %v554_v40 = vmul.f32 %v1115_v26, %v553_v31  ;;  %v567_v45 = vmul.f32 %v566_v33, %v544_v37  ;;  %v1202_v31 = vld [vmem:[#allocation6 + $0x20] sm:$0xff] }
 0x2d8   :  { %v1204_v33 = vld [vmem:[#allocation6] sm:$0xff] }
 0x2d9   :  { %v555_v56 = vadd.f32 %v1115_v26, %v554_v40  ;;  %v568_v54 = vadd.f32 %v567_v45, %v465_v34  ;;  %v1205_v34 = vld [vmem:[#allocation6 + $0x8] sm:$0xff]  ;;  %v577_v37 = vld [vmem:[#allocation3 + $0x60] sm:$0xff] }
 0x2da   :  { %v578_v40 = vld [vmem:[#allocation3 + $0x68] sm:$0xff] }
 0x2db   :  { %v559_v55 = vsel %vm558_vm14, %v1115_v26, %v555_v56  ;;  %1116 = vtanh.f32 %v568_v54  ;;  %v1848_v26 = vld [vmem:[#allocation6 + $0x40] sm:$0xff] }
 0x2dc   :  { %v564_v48 = vsel %vm561_vm15, %v563_v35, %v559_v55 }
 0x2dd   :  { %v570_v49 = vsub.f32 1.0, %v564_v48  ;;  %v572_v61 = vmul.f32 %v564_v48, %v1747_v63  ;;  %v1821_v63 = vld [vmem:[#allocation6 + $0x118] sm:$0xff] }
 0x2e1   :  { %v1117_v50 = vpop.eup %1116 }
 0x2e2   :  { %v571_v51 = vmul.f32 %v1117_v50, %v570_v49 }
 0x2e4   :  { %v1803_v60 = vadd.f32 %v572_v61, %v571_v51 }
 0x2e6   :  { %575 = vst [vmem:[#allocation9 + $0x18] sm:$0xff] %v1803_v60  ;;  %596 = vmatmul.f32.vlgmr.msrb.gmra.mxu0 %v1803_v60  ;;  %616 = vmatmul.f32.vlgmr.msrb.gmra.mxu1 %v1803_v60 }
 0x2e7   :  { %636 = vmatmul.f32.vlgmr.msrb.gmra.mxu2 %v1803_v60  ;;  %848 = vmatpush.msrb.mxu0 %v1809_v43 }
 0x2e8   :  { %922 = vmatpush.msrb.mxu1 %v1159_v47  ;;  %942 = vmatpush.msrb.mxu2 %v1160_v53 }
 0x2e9   :  { %849 = vmatpush.msrb.mxu0 %v1812_v52 }
 0x2ea   :  { %923 = vmatpush.msrb.mxu1 %v1162_v59  ;;  %943 = vmatpush.msrb.mxu2 %v1163_v57 }
 0x2eb   :  { %850 = vmatpush.msrb.mxu0 %v1815_v38 }
 0x2ec   :  { %924 = vmatpush.msrb.mxu1 %v1165_v36  ;;  %944 = vmatpush.msrb.mxu2 %v1166_v39 }
 0x2ed   :  { %851 = vmatpush.msrb.mxu0 %v1818_v62 }
 0x2ee   :  { %925 = vmatpush.msrb.mxu1 %v1168_v42  ;;  %945 = vmatpush.msrb.mxu2 %v1169_v58 }
 0x2ef   :  { %852 = vmatpush.msrb.mxu0 %v1821_v63 }
 0x2f0   :  { %926 = vmatpush.msrb.mxu1 %v1171_v0  ;;  %946 = vmatpush.msrb.mxu2 %v1172_v1 }
 0x2f1   :  { %853 = vmatpush.msrb.mxu0 %v1824_v2 }
 0x2f2   :  { %927 = vmatpush.msrb.mxu1 %v1174_v3  ;;  %947 = vmatpush.msrb.mxu2 %v1175_v4 }
 0x2f3   :  { %854 = vmatpush.msrb.mxu0 %v1827_v5 }
 0x2f4   :  { %928 = vmatpush.msrb.mxu1 %v1177_v6  ;;  %948 = vmatpush.msrb.mxu2 %v1178_v7 }
 0x2f5   :  { %855 = vmatpush.msrb.mxu0 %v1830_v8 }
 0x2f6   :  { %929 = vmatpush.msrb.mxu1 %v1180_v9  ;;  %949 = vmatpush.msrb.mxu2 %v1181_v10  ;;  %v579_v9 = vld [vmem:[#allocation3 + $0x70] sm:$0xff] }
 0x2f7   :  { %856 = vmatpush.msrb.mxu0 %v1833_v11 }
 0x2f8   :  { %930 = vmatpush.msrb.mxu1 %v1183_v12  ;;  %950 = vmatpush.msrb.mxu2 %v1184_v13 }
 0x2f9   :  { %857 = vmatpush.msrb.mxu0 %v1836_v14 }
 0x2fa   :  { %931 = vmatpush.msrb.mxu1 %v1186_v15  ;;  %951 = vmatpush.msrb.mxu2 %v1187_v16 }
 0x2fb   :  { %858 = vmatpush.msrb.mxu0 %v1839_v17 }
 0x2fc   :  { %932 = vmatpush.msrb.mxu1 %v1189_v18  ;;  %952 = vmatpush.msrb.mxu2 %v1190_v19 }
 0x2fd   :  { %859 = vmatpush.msrb.mxu0 %v1842_v20 }
 0x2fe   :  { %933 = vmatpush.msrb.mxu1 %v1192_v21  ;;  %953 = vmatpush.msrb.mxu2 %v1193_v22 }
 0x2ff   :  { %860 = vmatpush.msrb.mxu0 %v1845_v23 }
 0x300   :  { %934 = vmatpush.msrb.mxu1 %v1195_v24  ;;  %954 = vmatpush.msrb.mxu2 %v1196_v25 }
 0x301   :  { %861 = vmatpush.msrb.mxu0 %v1848_v26 }
 0x302   :  { %935 = vmatpush.msrb.mxu1 %v1198_v27  ;;  %955 = vmatpush.msrb.mxu2 %v1199_v28 }
 0x303   :  { %862 = vmatpush.msrb.mxu0 %v1851_v29 }
 0x304   :  { %936 = vmatpush.msrb.mxu1 %v1201_v30  ;;  %956 = vmatpush.msrb.mxu2 %v1202_v31 }
 0x305   :  { %863 = vmatpush.msrb.mxu0 %v1854_v32 }
 0x306   :  { %937 = vmatpush.msrb.mxu1 %v1204_v33  ;;  %957 = vmatpush.msrb.mxu2 %v1205_v34 }
 0x363   :  { %v597_v44 = vpop.f32.mrf.mxu0  ;;  %v617_v45 = vpop.f32.mrf.mxu1 }
 0x364   :  { %v640_v46 = vadd.f32 %v597_v44, %v577_v37  ;;  %v660_v56 = vadd.f32 %v617_v45, %v578_v40  ;;  %v1884_v45 = vld [vmem:[%s1895_s2] ss:$0 sm:$0xff]  ;;  %s1314_s2 = smov [#allocation9]  }
 0x365   :  { %s1037_s7 = sshll.u32 %s1314_s2, 4  ;;  %s1038_s7 = int_to_ptr.vmem [resolvable:$true] %s1037_s7 }
 0x366   :  { %v1061_v54 = vmul.f32 -1.442695, %v640_v46  ;;  %v1062_v35 = vmul.f32 -1.442695, %v660_v56 }
 0x368   :  { %1118 = vpow2.f32 %v1061_v54 }
 0x369   :  { %1120 = vpow2.f32 %v1062_v35 }
 0x36a   :  { %v637_v0 = vpop.f32.mrf.mxu2 }
 0x36b   :  { %v680_v6 = vadd.f32 %v1631_v41, %v637_v0  ;;  %v806_v0 = vld [vmem:[#allocation3 + $0x98] sm:$0xff] }
 0x36e   :  { %v1119_v55 = vpop.eup %1118 }
 0x36f   :  { %v1121_v48 = vpop.eup %1120  ;;  %v644_v49 = vadd.f32 1.0, %v1119_v55  ;;  %v693_v55 = vld [vmem:[#allocation3 + $0x88] sm:$0xff] }
 0x370   :  { %v664_v50 = vadd.f32 1.0, %v1121_v48 }
 0x371   :  { %1122 = vrcp.f32 %v644_v49  ;;  %v656_v36 = vand.u32 2147483648, %v644_v49  ;;  %v654_v42 = vand.u32 2147483647, %v644_v49  ;;  %vm650_vm1 = vweird.f32 %v644_v49 }
 0x372   :  { %1124 = vrcp.f32 %v664_v50  ;;  %v676_v12 = vand.u32 2147483648, %v664_v50  ;;  %vm670_vm5 = vweird.f32 %v664_v50  ;;  %v674_v15 = vand.u32 2147483647, %v664_v50 }
 0x373   :  { %v657_v3 = vor.u32 1.1754944e-38, %v656_v36  ;;  %vm655_vm3 = vcmp.eq.f32.partialorder %v654_v42, 8.507059e+37 }
 0x374   :  { %v677_v19 = vor.u32 1.1754944e-38, %v676_v12  ;;  %vm675_vm7 = vcmp.eq.f32.partialorder %v674_v15, 8.507059e+37 }
 0x377   :  { %v1123_v51 = vpop.eup %1122 }
 0x378   :  { %v1125_v61 = vpop.eup %1124  ;;  %v646_v47 = vmul.f32 %v1123_v51, %v644_v49  ;;  %vm651_vm0 = vweird.f32 %v1123_v51 }
 0x379   :  { %v666_v53 = vmul.f32 %v1125_v61, %v664_v50  ;;  %vm652_vm2 = vmor %vm650_vm1, %vm651_vm0  ;;  %vm671_vm4 = vweird.f32 %v1125_v61 }
 0x37a   :  { %v647_v59 = vsub.f32 1.0, %v646_v47  ;;  %vm672_vm6 = vmor %vm670_vm5, %vm671_vm4 }
 0x37b   :  { %v667_v57 = vsub.f32 1.0, %v666_v53 }
 0x37c   :  { %v648_v39 = vmul.f32 %v1123_v51, %v647_v59 }
 0x37d   :  { %v668_v58 = vmul.f32 %v1125_v61, %v667_v57 }
 0x37e   :  { %v649_v1 = vadd.f32 %v1123_v51, %v648_v39 }
 0x37f   :  { %v669_v7 = vadd.f32 %v1125_v61, %v668_v58  ;;  %v805_v58 = vld [vmem:[#allocation3 + $0x90] sm:$0xff] }
 0x380   :  { %v653_v4 = vsel %vm652_vm2, %v1123_v51, %v649_v1 }
 0x381   :  { %v658_v10 = vsel %vm655_vm3, %v657_v3, %v653_v4  ;;  %v673_v18 = vsel %vm672_vm6, %v1125_v61, %v669_v7 }
 0x382   :  { %v681_v13 = vmul.f32 %v680_v6, %v658_v10  ;;  %v678_v21 = vsel %vm675_vm7, %v677_v19, %v673_v18 }
 0x383   :  { %v684_v22 = vsub.f32 1.0, %v678_v21  ;;  %v686_v41 = vmul.f32 %v678_v21, %v1803_v60  ;;  %v692_v60 = vld [vmem:[#allocation3 + $0x80] sm:$0xff] }
 0x384   :  { %v682_v16 = vadd.f32 %v681_v13, %v579_v9 }
 0x386   :  { %1126 = vtanh.f32 %v682_v16 }
 0x38c   :  { %v1127_v24 = vpop.eup %1126 }
 0x38d   :  { %v685_v25 = vmul.f32 %v1127_v24, %v684_v22 }
 0x38f   :  { %v1859_v27 = vadd.f32 %v686_v41, %v685_v25 }
 0x391   :  { %689 = vst [vmem:[#allocation9 + $0x20] sm:$0xff] %v1859_v27  ;;  %710 = vmatmul.f32.vlgmr.msrb.gmra.mxu3 %v1859_v27  ;;  %730 = vmatmul.f32.vlgmr.msra.gmra.mxu0 %v1859_v27 }
 0x392   :  { %750 = vmatmul.f32.vlgmr.msra.gmra.mxu1 %v1859_v27  ;;  %962 = vmatpush.msrb.mxu3 %v1809_v43 }
 0x394   :  { %963 = vmatpush.msrb.mxu3 %v1812_v52 }
 0x396   :  { %964 = vmatpush.msrb.mxu3 %v1815_v38 }
 0x398   :  { %965 = vmatpush.msrb.mxu3 %v1818_v62  ;;  %v691_v62 = vld [vmem:[#allocation3 + $0x78] sm:$0xff] }
 0x39a   :  { %966 = vmatpush.msrb.mxu3 %v1821_v63 }
 0x39c   :  { %967 = vmatpush.msrb.mxu3 %v1824_v2 }
 0x39e   :  { %968 = vmatpush.msrb.mxu3 %v1827_v5 }
 0x3a0   :  { %969 = vmatpush.msrb.mxu3 %v1830_v8 }
 0x3a2   :  { %970 = vmatpush.msrb.mxu3 %v1833_v11 }
 0x3a4   :  { %971 = vmatpush.msrb.mxu3 %v1836_v14 }
 0x3a6   :  { %972 = vmatpush.msrb.mxu3 %v1839_v17 }
 0x3a8   :  { %973 = vmatpush.msrb.mxu3 %v1842_v20 }
 0x3aa   :  { %974 = vmatpush.msrb.mxu3 %v1845_v23 }
 0x3ac   :  { %975 = vmatpush.msrb.mxu3 %v1848_v26 }
 0x3ae   :  { %976 = vmatpush.msrb.mxu3 %v1851_v29 }
 0x3b0   :  { %977 = vmatpush.msrb.mxu3 %v1854_v32 }
 0x40e   :  { %v731_v43 = vpop.f32.mrf.mxu0 }
 0x40f   :  { %v774_v52 = vadd.f32 %v731_v43, %v692_v60  ;;  %v751_v37 = vpop.f32.mrf.mxu1 }
 0x410   :  { %v794_v46 = vadd.f32 %v1884_v45, %v751_v37 }
 0x411   :  { %v1064_v38 = vmul.f32 -1.442695, %v774_v52 }
 0x413   :  { %1128 = vpow2.f32 %v1064_v38 }
 0x414   :  { %v711_v63 = vpop.f32.mrf.mxu3 }
 0x415   :  { %v754_v2 = vadd.f32 %v711_v63, %v691_v62 }
 0x417   :  { %v1063_v5 = vmul.f32 -1.442695, %v754_v2 }
 0x419   :  { %v1129_v8 = vpop.eup %1128  ;;  %1130 = vpow2.f32 %v1063_v5 }
 0x41a   :  { %v778_v11 = vadd.f32 1.0, %v1129_v8  ;;  %v807_v8 = vld [vmem:[#allocation3 + $0xa0] sm:$0xff] }
 0x41c   :  { %1132 = vrcp.f32 %v778_v11  ;;  %v790_v48 = vand.u32 2147483648, %v778_v11  ;;  %vm784_vm13 = vweird.f32 %v778_v11  ;;  %v788_v50 = vand.u32 2147483647, %v778_v11 }
 0x41e   :  { %v791_v47 = vor.u32 1.1754944e-38, %v790_v48  ;;  %vm789_vm15 = vcmp.eq.f32.partialorder %v788_v50, 8.507059e+37 }
 0x41f   :  { %v1131_v14 = vpop.eup %1130 }
 0x420   :  { %v758_v17 = vadd.f32 1.0, %v1131_v14 }
 0x422   :  { %1134 = vrcp.f32 %v758_v17  ;;  %v1133_v20 = vpop.eup %1132  ;;  %v770_v31 = vand.u32 2147483648, %v758_v17  ;;  %v768_v33 = vand.u32 2147483647, %v758_v17  ;;  %vm764_vm9 = vweird.f32 %v758_v17 }
 0x423   :  { %v780_v23 = vmul.f32 %v1133_v20, %v778_v11  ;;  %vm785_vm12 = vweird.f32 %v1133_v20 }
 0x424   :  { %v771_v44 = vor.u32 1.1754944e-38, %v770_v31  ;;  %vm769_vm11 = vcmp.eq.f32.partialorder %v768_v33, 8.507059e+37  ;;  %vm786_vm14 = vmor %vm784_vm13, %vm785_vm12 }
 0x425   :  { %v781_v29 = vsub.f32 1.0, %v780_v23 }
 0x427   :  { %v782_v34 = vmul.f32 %v1133_v20, %v781_v29 }
 0x428   :  { %v1135_v26 = vpop.eup %1134 }
 0x429   :  { %v760_v28 = vmul.f32 %v1135_v26, %v758_v17  ;;  %vm765_vm8 = vweird.f32 %v1135_v26  ;;  %v783_v54 = vadd.f32 %v1133_v20, %v782_v34  ;;  %v919_v34 = vld [vmem:[#allocation3 + $0xa8] sm:$0xff] }
 0x42a   :  { %vm766_vm10 = vmor %vm764_vm9, %vm765_vm8 }
 0x42b   :  { %v761_v30 = vsub.f32 1.0, %v760_v28  ;;  %v787_v61 = vsel %vm786_vm14, %v1133_v20, %v783_v54 }
 0x42c   :  { %v792_v53 = vsel %vm789_vm15, %v791_v47, %v787_v61 }
 0x42d   :  { %v762_v32 = vmul.f32 %v1135_v26, %v761_v30  ;;  %v798_v59 = vsub.f32 1.0, %v792_v53  ;;  %v800_v39 = vmul.f32 %v792_v53, %v1859_v27 }
 0x42f   :  { %v763_v40 = vadd.f32 %v1135_v26, %v762_v32 }
 0x431   :  { %v767_v56 = vsel %vm766_vm10, %v1135_v26, %v763_v40 }
 0x432   :  { %v772_v35 = vsel %vm769_vm11, %v771_v44, %v767_v56 }
 0x433   :  { %v795_v49 = vmul.f32 %v794_v46, %v772_v35  ;;  %v920_v46 = vld [vmem:[#allocation3 + $0xb0] sm:$0xff] }
 0x435   :  { %v796_v51 = vadd.f32 %v795_v49, %v693_v55 }
 0x437   :  { %1136 = vtanh.f32 %v796_v51 }
 0x43d   :  { %v1137_v57 = vpop.eup %1136 }
 0x43e   :  { %v799_v36 = vmul.f32 %v1137_v57, %v798_v59 }
 0x440   :  { %v801_v42 = vadd.f32 %v800_v39, %v799_v36 }
 0x442   :  { %803 = vst [vmem:[#allocation9 + $0x28] sm:$0xff] %v801_v42  ;;  %824 = vmatmul.f32.vlgmr.msra.gmra.mxu2 %v801_v42  ;;  %844 = vmatmul.f32.vlgmr.msra.gmra.mxu3 %v801_v42 }
 0x443   :  { %864 = vmatmul.f32.vlgmr.msrb.gmra.mxu0 %v801_v42 }
 0x4c0   :  { %v865_v60 = vpop.f32.mrf.mxu0 }
 0x4c1   :  { %v908_v62 = vadd.f32 %v1884_v45, %v865_v60 }
 0x4c5   :  { %v825_v1 = vpop.f32.mrf.mxu2  ;;  %v845_v3 = vpop.f32.mrf.mxu3 }
 0x4c6   :  { %v868_v4 = vadd.f32 %v825_v1, %v805_v58  ;;  %v888_v6 = vadd.f32 %v845_v3, %v806_v0 }
 0x4c8   :  { %v1065_v7 = vmul.f32 -1.442695, %v868_v4  ;;  %v1066_v9 = vmul.f32 -1.442695, %v888_v6  ;;  %v921_v6 = vld [vmem:[#allocation3 + $0xb8] sm:$0xff] }
 0x4ca   :  { %1138 = vpow2.f32 %v1065_v7 }
 0x4cb   :  { %1140 = vpow2.f32 %v1066_v9 }
 0x4d0   :  { %v1139_v10 = vpop.eup %1138 }
 0x4d1   :  { %v1141_v12 = vpop.eup %1140  ;;  %v872_v13 = vadd.f32 1.0, %v1139_v10 }
 0x4d2   :  { %v892_v15 = vadd.f32 1.0, %v1141_v12 }
 0x4d3   :  { %1142 = vrcp.f32 %v872_v13  ;;  %v884_v24 = vand.u32 2147483648, %v872_v13  ;;  %v882_v27 = vand.u32 2147483647, %v872_v13  ;;  %vm878_vm1 = vweird.f32 %v872_v13 }
 0x4d4   :  { %1144 = vrcp.f32 %v892_v15  ;;  %v904_v14 = vand.u32 2147483648, %v892_v15  ;;  %vm898_vm5 = vweird.f32 %v892_v15  ;;  %v902_v17 = vand.u32 2147483647, %v892_v15 }
 0x4d5   :  { %v885_v38 = vor.u32 1.1754944e-38, %v884_v24  ;;  %vm883_vm3 = vcmp.eq.f32.partialorder %v882_v27, 8.507059e+37 }
 0x4d6   :  { %v905_v26 = vor.u32 1.1754944e-38, %v904_v14  ;;  %vm903_vm7 = vcmp.eq.f32.partialorder %v902_v17, 8.507059e+37 }
 0x4d9   :  { %v1143_v16 = vpop.eup %1142 }
 0x4da   :  { %v1145_v18 = vpop.eup %1144  ;;  %v874_v19 = vmul.f32 %v1143_v16, %v872_v13  ;;  %vm879_vm0 = vweird.f32 %v1143_v16 }
 0x4db   :  { %v894_v21 = vmul.f32 %v1145_v18, %v892_v15  ;;  %vm880_vm2 = vmor %vm878_vm1, %vm879_vm0  ;;  %vm899_vm4 = vweird.f32 %v1145_v18 }
 0x4dc   :  { %v875_v22 = vsub.f32 1.0, %v874_v19  ;;  %vm900_vm6 = vmor %vm898_vm5, %vm899_vm4 }
 0x4dd   :  { %v895_v25 = vsub.f32 1.0, %v894_v21 }
 0x4de   :  { %v876_v41 = vmul.f32 %v1143_v16, %v875_v22 }
 0x4df   :  { %v896_v43 = vmul.f32 %v1145_v18, %v895_v25 }
 0x4e0   :  { %v877_v52 = vadd.f32 %v1143_v16, %v876_v41 }
 0x4e1   :  { %v897_v5 = vadd.f32 %v1145_v18, %v896_v43 }
 0x4e2   :  { %v881_v63 = vsel %vm880_vm2, %v1143_v16, %v877_v52 }
 0x4e3   :  { %v886_v2 = vsel %vm883_vm3, %v885_v38, %v881_v63  ;;  %v901_v23 = vsel %vm900_vm6, %v1145_v18, %v897_v5 }
 0x4e4   :  { %v909_v11 = vmul.f32 %v908_v62, %v886_v2  ;;  %v906_v28 = vsel %vm903_vm7, %v905_v26, %v901_v23 }
 0x4e5   :  { %v912_v29 = vsub.f32 1.0, %v906_v28  ;;  %v914_v32 = vmul.f32 %v906_v28, %v801_v42 }
 0x4e6   :  { %v910_v20 = vadd.f32 %v909_v11, %v807_v8 }
 0x4e8   :  { %1146 = vtanh.f32 %v910_v20 }
 0x4ee   :  { %v1147_v30 = vpop.eup %1146 }
 0x4ef   :  { %v913_v31 = vmul.f32 %v1147_v30, %v912_v29 }
 0x4f1   :  { %v915_v33 = vadd.f32 %v914_v32, %v913_v31 }
 0x4f3   :  { %917 = vst [vmem:[#allocation9 + $0x30] sm:$0xff] %v915_v33  ;;  %938 = vmatmul.f32.vlgmr.msrb.gmra.mxu1 %v915_v33  ;;  %958 = vmatmul.f32.vlgmr.msrb.gmra.mxu2 %v915_v33 }
 0x4f4   :  { %978 = vmatmul.f32.vlgmr.msrb.gmra.mxu3 %v915_v33 }
 0x570   :  { %v939_v37 = vpop.f32.mrf.mxu1 }
 0x571   :  { %v982_v40 = vadd.f32 %v939_v37, %v919_v34 }
 0x573   :  { %v1067_v44 = vmul.f32 -1.442695, %v982_v40 }
 0x575   :  { %1148 = vpow2.f32 %v1067_v44 }
 0x576   :  { %v959_v56 = vpop.f32.mrf.mxu2 }
 0x577   :  { %v1002_v54 = vadd.f32 %v959_v56, %v920_v46  ;;  %v979_v39 = vpop.f32.mrf.mxu3 }
 0x578   :  { %v1022_v4 = vadd.f32 %v1884_v45, %v979_v39 }
 0x579   :  { %v1068_v35 = vmul.f32 -1.442695, %v1002_v54 }
 0x57b   :  { %v1149_v55 = vpop.eup %1148  ;;  %1150 = vpow2.f32 %v1068_v35 }
 0x57c   :  { %v986_v48 = vadd.f32 1.0, %v1149_v55 }
 0x57e   :  { %1152 = vrcp.f32 %v986_v48  ;;  %v998_v53 = vand.u32 2147483648, %v986_v48  ;;  %v996_v57 = vand.u32 2147483647, %v986_v48  ;;  %vm992_vm9 = vweird.f32 %v986_v48 }
 0x580   :  { %v999_v0 = vor.u32 1.1754944e-38, %v998_v53  ;;  %vm997_vm11 = vcmp.eq.f32.partialorder %v996_v57, 8.507059e+37 }
 0x581   :  { %v1151_v49 = vpop.eup %1150 }
 0x582   :  { %v1006_v50 = vadd.f32 1.0, %v1151_v49 }
 0x584   :  { %v1153_v51 = vpop.eup %1152  ;;  %1154 = vrcp.f32 %v1006_v50  ;;  %v1018_v10 = vand.u32 2147483648, %v1006_v50  ;;  %v1016_v13 = vand.u32 2147483647, %v1006_v50  ;;  %vm1012_vm13 = vweird.f32 %v1006_v50 }
 0x585   :  { %v988_v61 = vmul.f32 %v1153_v51, %v986_v48  ;;  %vm993_vm8 = vweird.f32 %v1153_v51 }
 0x586   :  { %vm994_vm10 = vmor %vm992_vm9, %vm993_vm8  ;;  %v1019_v18 = vor.u32 1.1754944e-38, %v1018_v10  ;;  %vm1017_vm15 = vcmp.eq.f32.partialorder %v1016_v13, 8.507059e+37 }
 0x587   :  { %v989_v47 = vsub.f32 1.0, %v988_v61 }
 0x589   :  { %v990_v59 = vmul.f32 %v1153_v51, %v989_v47 }
 0x58a   :  { %v1155_v36 = vpop.eup %1154 }
 0x58b   :  { %v1008_v42 = vmul.f32 %v1155_v36, %v1006_v50  ;;  %v991_v58 = vadd.f32 %v1153_v51, %v990_v59  ;;  %vm1013_vm12 = vweird.f32 %v1155_v36 }
 0x58c   :  { %vm1014_vm14 = vmor %vm1012_vm13, %vm1013_vm12 }
 0x58d   :  { %v1009_v1 = vsub.f32 1.0, %v1008_v42  ;;  %v995_v3 = vsel %vm994_vm10, %v1153_v51, %v991_v58 }
 0x58e   :  { %v1000_v7 = vsel %vm997_vm11, %v999_v0, %v995_v3 }
 0x58f   :  { %v1010_v9 = vmul.f32 %v1155_v36, %v1009_v1  ;;  %v1023_v12 = vmul.f32 %v1022_v4, %v1000_v7 }
 0x591   :  { %v1011_v15 = vadd.f32 %v1155_v36, %v1010_v9  ;;  %v1024_v16 = vadd.f32 %v1023_v12, %v921_v6 }
 0x593   :  { %v1015_v19 = vsel %vm1014_vm14, %v1155_v36, %v1011_v15  ;;  %1156 = vtanh.f32 %v1024_v16 }
 0x594   :  { %v1020_v21 = vsel %vm1017_vm15, %v1019_v18, %v1015_v19 }
 0x595   :  { %v1026_v22 = vsub.f32 1.0, %v1020_v21  ;;  %v1028_v25 = vmul.f32 %v1020_v21, %v915_v33 }
 0x599   :  { %v1157_v45 = vpop.eup %1156 }
 0x59a   :  { %v1027_v24 = vmul.f32 %v1157_v45, %v1026_v22 }
 0x59c   :  { %v1029_v41 = vadd.f32 %v1028_v25, %v1027_v24 }
 0x59e   :  { %1031 = vst [vmem:[#allocation9 + $0x38] sm:$0xff] %v1029_v41 }
 0x59f   :  { %1045 = dma.vmem_to_hbm [thread:$0]  %s1038_s7, 1024, %s1040_s10, [#allocation5], %s1315_s11, %s1315_s11, %s1316_s12  }
 0x5a0   :  { %1307 = dma.done.wait [#allocation5], 1024  }
 0x5a1   :  { %1308 = vsyncadd [#allocation5], 4294966272 }
 0x5a2   :  { %1050 = vsyncpa [#allocation4], 1 }
 0x5a3   :  { %1051 = vsyncpa [#allocation7], 1 }
 0x5a4   :  { %1052 = vsyncpa [#allocation5], 1 }

</bundles_post_ra>
